<compile_context>
chip_gen: v6e
topology: v6e:2x2x1
jax: 0.10.0
libtpu: 0.0.40
codegen_flags: <defaults>
</compile_context>

<pallas_src>
import functools

import jax
import jax.numpy as jnp
from jax.experimental import pallas as pl
from jax.experimental.pallas import tpu as pltpu


def _ds(start, size, stride):
    """pl.ds that only carries a stride when one is actually needed."""
    return pl.ds(start, size) if stride == 1 else pl.ds(start, size, stride)


def _tap_bounds(k, d, stride, pad, H, W, Ho, Wo):
    """Static per-tap bounds.

    For tap t = kh*k + kw, output pixel (i, j) reads input pixel
    (i*stride + kh*d - pad, j*stride + kw*d - pad).  Returns, per tap, the
    output-pixel window [i_lo, i_hi) x [j_lo, j_hi) whose source is in bounds,
    plus the matching input start row/col (r0, c0).  Everything outside that
    window corresponds to the convolution's zero padding.
    """
    bounds = []
    for kh in range(k):
        for kw in range(k):
            off_h = kh * d - pad
            off_w = kw * d - pad
            i_lo = max(0, -(off_h // stride))
            i_hi = min(Ho, (H - 1 - off_h) // stride + 1)
            j_lo = max(0, -(off_w // stride))
            j_hi = min(Wo, (W - 1 - off_w) // stride + 1)
            r0 = i_lo * stride + off_h
            c0 = j_lo * stride + off_w
            bounds.append((i_lo, i_hi, j_lo, j_hi, r0, c0))
    return tuple(bounds)


def _cdilated_kernel(x_ref, w_ref, o_ref, patches_ref, *, stride, tap_bounds):
    """One grid step = B_blk batch elements.

    x_ref       : (B_blk, H, W, Cin)        un-padded input block (VMEM)
    w_ref       : (k*k*Cin, Coutp)          im2col weights, Coutp lane-padded
    o_ref       : (B_blk, Ho, Wo, Coutp)    lane-dense output block
    patches_ref : (B_blk, Ho, Wo, k*k*Cin)  im2col scratch (compute dtype)
    """
    B, _, _, Cin = x_ref.shape
    _, Ho, Wo, _ = patches_ref.shape
    pdt = patches_ref.dtype

    for t, (i_lo, i_hi, j_lo, j_hi, r0, c0) in enumerate(tap_bounds):
        cs, ce = t * Cin, (t + 1) * Cin
        if i_hi <= i_lo or j_hi <= j_lo:
            # Tap entirely out of bounds (degenerate, tiny images only).
            patches_ref[:, :, :, cs:ce] = jnp.zeros((B, Ho, Wo, Cin), pdt)
            continue
        # Zero only the out-of-bounds border strips of this tap.  They are
        # perimeter-sized (cheap) and rewritten every step, so correctness
        # does not depend on grid order or megacore sharding.
        if i_lo > 0:
            patches_ref[:, 0:i_lo, :, cs:ce] = (
                jnp.zeros((B, i_lo, Wo, Cin), pdt))
        if i_hi < Ho:
            patches_ref[:, i_hi:Ho, :, cs:ce] = (
                jnp.zeros((B, Ho - i_hi, Wo, Cin), pdt))
        if j_lo > 0:
            patches_ref[:, i_lo:i_hi, 0:j_lo, cs:ce] = (
                jnp.zeros((B, i_hi - i_lo, j_lo, Cin), pdt))
        if j_hi < Wo:
            patches_ref[:, i_lo:i_hi, j_hi:Wo, cs:ce] = (
                jnp.zeros((B, i_hi - i_lo, Wo - j_hi, Cin), pdt))
        # In-bounds window: slice the input ref directly into the scratch
        # (one pass over the k*k-expanded data, no concatenate, no big vreg
        # live ranges).
        # TODO(synk): for stride > 1 the strided W-read is sublane/XLU work
        # repeated k*k times; a once-per-step W-decimation (or a wrapper-side
        # phase-split layout) would move it off the per-tap path.
        nvh, nvw = i_hi - i_lo, j_hi - j_lo
        val = x_ref[:, _ds(r0, nvh, stride), _ds(c0, nvw, stride), :]
        patches_ref[:, i_lo:i_hi, j_lo:j_hi, cs:ce] = val.astype(pdt)

    # One MXU matmul per batch element: (Ho*Wo, k*k*Cin) @ (k*k*Cin, Coutp),
    # f32 accumulation, lane-dense store (Coutp is 128-padded or >= 128).
    for b in range(B):
        acc = jax.lax.dot_general(
            patches_ref[b], w_ref[...],
            dimension_numbers=(((2,), (0,)), ((), ())),
            preferred_element_type=jnp.float32)
        o_ref[b] = acc.astype(o_ref.dtype)


def _tiled_vmem_bytes(shape, dtype):
    """VMEM footprint of an array in Mosaic's (sublane, lane) tiled layout."""
    itemsize = jnp.dtype(dtype).itemsize
    dims = list(shape) if len(shape) >= 2 else [1] + list(shape)
    sub_mult = 8 * max(1, 4 // itemsize)      # 8 (f32) / 16 (bf16) / 32 (i8)
    lead = 1
    for s in dims[:-2]:
        lead *= s
    sub = -(-dims[-2] // sub_mult) * sub_mult
    lane = -(-dims[-1] // 128) * 128
    return lead * sub * lane * itemsize


def cdilated_forward_nhwc(x_nhwc, weight_oihw, *, stride=1, d=1,
                          compute_dtype=None, batch_block=None):
    """Dilated conv (PyTorch CDilated semantics), NHWC in / NHWC out.

    Weight stays OIHW (PyTorch layout).  Callers keeping the whole network in
    NHWC should use this entry point and skip the NCHW transposes.
    """
    N, H, W, Cin = x_nhwc.shape
    Cout, Cin_w, kH, kW = weight_oihw.shape
    assert Cin == Cin_w and kH == kW, (x_nhwc.shape, weight_oihw.shape)
    k = kH
    pad = ((k - 1) // 2) * d

    # PyTorch Conv2d output-size formula.
    Ho = (H + 2 * pad - d * (k - 1) - 1) // stride + 1
    Wo = (W + 2 * pad - d * (k - 1) - 1) // stride + 1
    out_dtype = x_nhwc.dtype

    patch_dtype = (jnp.dtype(compute_dtype) if compute_dtype is not None
                   else jnp.dtype(x_nhwc.dtype))
    if x_nhwc.dtype != patch_dtype:
        x_nhwc = x_nhwc.astype(patch_dtype)          # cast once, wrapper-side

    # (Cout, Cin, kH, kW) -> (kH, kW, Cin, Cout) -> (k*k*Cin, Cout); row order
    # (kh, kw, cin) matches the in-kernel tap layout.  Pad Cout up to 128 so
    # the MXU result and the output store are lane-dense (free on the MXU,
    # which has >= 128 output columns anyway); the pad is sliced off below.
    K = k * k * Cin
    Coutp = Cout if Cout >= 128 else 128
    w_flat = jnp.transpose(weight_oihw, (2, 3, 1, 0)).reshape(K, Cout)
    if Coutp != Cout:
        w_flat = jnp.pad(w_flat, ((0, 0), (0, Coutp - Cout)))
    w_flat = w_flat.astype(patch_dtype)

    tap_bounds = _tap_bounds(k, d, stride, pad, H, W, Ho, Wo)

    # --- generation-aware VMEM budget --------------------------------------
    try:
        vmem_cap = int(pltpu.get_tpu_info().vmem_capacity_bytes)
    except Exception:                       # interpret mode / older runtimes
        vmem_cap = 64 << 20                 # safe on every generation
    budget = int(0.9 * vmem_cap)

    def vmem_need(b):
        return int(1.25 * (
            2 * _tiled_vmem_bytes((b, H, W, Cin), patch_dtype)       # x (dbl)
            + 2 * _tiled_vmem_bytes((K, Coutp), patch_dtype)         # weights
            + 2 * _tiled_vmem_bytes((b, Ho, Wo, Coutp), out_dtype)   # out (dbl)
            + _tiled_vmem_bytes((b, Ho, Wo, K), patch_dtype)         # im2col
            + _tiled_vmem_bytes((b, Ho, Wo, Coutp), jnp.float32)))   # f32 acc

    # --- batch blocking -----------------------------------------------------
    if batch_block is not None:
        if N % batch_block != 0:
            raise ValueError(f"batch_block={batch_block} must divide N={N}")
        if vmem_need(batch_block) > budget:
            raise ValueError("requested batch_block does not fit the VMEM budget")
        B_blk = batch_block
    else:
        B_blk = None
        for b in sorted([c for c in range(1, N + 1) if N % c == 0],
                        reverse=True):
            if N > 1 and N // b < 2:
                continue    # keep >= 2 grid steps: pipelining + both v7x TCs
            if vmem_need(b) <= budget:
                B_blk = b
                break
        if B_blk is None:
            # TODO(synk): add an output-row-tile grid axis with a halo'd input
            # window (also marked "parallel" so a single image can use both
            # v7x TensorCores) so one image never has to fit in VMEM.
            raise ValueError(
                f"one {H}x{W}x{Cin} image does not fit the "
                f"{budget >> 20} MiB VMEM budget; spatial tiling is required")

    need = vmem_need(B_blk)
    vmem_limit = int(min(budget, max(32 << 20, 2 * need)))

    kernel = functools.partial(_cdilated_kernel, stride=stride,
                               tap_bounds=tap_bounds)

    out = pl.pallas_call(
        kernel,
        out_shape=jax.ShapeDtypeStruct((N, Ho, Wo, Coutp), out_dtype),
        grid_spec=pltpu.PrefetchScalarGridSpec(
            num_scalar_prefetch=0,
            grid=(N // B_blk,),
            in_specs=[
                pl.BlockSpec((B_blk, H, W, Cin), lambda b: (b, 0, 0, 0)),
                pl.BlockSpec((K, Coutp), lambda b: (0, 0)),
            ],
            out_specs=pl.BlockSpec((B_blk, Ho, Wo, Coutp),
                                   lambda b: (b, 0, 0, 0)),
            scratch_shapes=[pltpu.VMEM((B_blk, Ho, Wo, K), patch_dtype)],
        ),
        compiler_params=pltpu.CompilerParams(
            dimension_semantics=("parallel",),
            vmem_limit_bytes=vmem_limit),
    )(x_nhwc, w_flat)

    # Slice the Cout lane-pad off here; it fuses with any following transpose.
    return out[..., :Cout] if Coutp != Cout else out


def cdilated_forward(x_nchw, weight_oihw, *, stride=1, d=1,
                     compute_dtype=None, batch_block=None):
    """Drop-in CDilated.forward (NCHW in / NCHW out, OIHW weight, no bias)."""
    # TODO(synk): per-layer NCHW<->NHWC transposes are extra HBM passes (worst
    # on v5e's lower bandwidth); keep the surrounding network in NHWC and call
    # cdilated_forward_nhwc directly.
    x_nhwc = jnp.transpose(x_nchw, (0, 2, 3, 1))
    out_nhwc = cdilated_forward_nhwc(
        x_nhwc, weight_oihw, stride=stride, d=d,
        compute_dtype=compute_dtype, batch_block=batch_block)
    return jnp.transpose(out_nhwc, (0, 3, 1, 2))


if __name__ == "__main__":
    # CDilated(nIn=4, nOut=8, kSize=3, stride=1, d=2)
    nIn, nOut, kSize, stride, d = 4, 8, 3, 1, 2
    N, H, W = 2, 16, 16

    key = jax.random.PRNGKey(0)
    kx, kw = jax.random.split(key)
    x = jax.random.normal(kx, (N, nIn, H, W), dtype=jnp.float32)          # NCHW
    weight = jax.random.normal(
        kw, (nOut, nIn, kSize, kSize), dtype=jnp.float32) * 0.1           # OIHW

    out = cdilated_forward(x, weight, stride=stride, d=d)
    out = jax.block_until_ready(out)

    # Cross-check against XLA's conv (same semantics as torch.nn.Conv2d,
    # bias=False).  NOTE: validates the f32 path; a bf16 compute_dtype run
    # needs a looser tolerance.
    pad = ((kSize - 1) // 2) * d
    ref = jax.lax.conv_general_dilated(
        x, weight,
        window_strides=(stride, stride),
        padding=((pad, pad), (pad, pad)),
        rhs_dilation=(d, d),
        dimension_numbers=("NCHW", "OIHW", "NCHW"),
    )
    assert out.shape == ref.shape, (out.shape, ref.shape)
    assert jnp.allclose(out, ref, atol=1e-4, rtol=1e-4)

    print("KERNEL_OK")
</pallas_src>

<mosaic_0001>
module attributes {stable_mosaic.version = 11 : i64} {
  func.func @_cdilated_kernel(%arg0: i32, %arg1: memref<1x16x16x4xf32, #tpu.memory_space<vmem>>, %arg2: memref<36x128xf32, #tpu.memory_space<vmem>>, %arg3: memref<1x16x16x128xf32, #tpu.memory_space<vmem>>, %arg4: memref<1x16x16x36xf32, #tpu.memory_space<vmem>>) attributes {dimension_semantics = [#tpu.dimension_semantics<parallel>], iteration_bounds = array<i64: 2>, scalar_prefetch = 0 : i64, scratch_operands = 1 : i64, tpu.core_type = #tpu.core_type<tc>, window_params = [{transform_indices = @transform_0, window_bounds = array<i64: 1, 16, 16, 4>}, {pipeline_mode = #tpu.pipeline_mode<synchronous>, transform_indices = @transform_1, window_bounds = array<i64: 36, 128>}, {transform_indices = @transform_2, window_bounds = array<i64: 1, 16, 16, 128>}]} {
    %cst = arith.constant 0.000000e+00 : f32
    %0 = vector.broadcast %cst : f32 to vector<1x2x16x4xf32>
    %c0 = arith.constant 0 : index
    %c0_0 = arith.constant 0 : index
    %c0_1 = arith.constant 0 : index
    %c0_2 = arith.constant 0 : index
    %1 = vector.load %arg4[%c0, %c0_0, %c0_1, %c0_2] : memref<1x16x16x36xf32, #tpu.memory_space<vmem>>, vector<1x2x16x4xf32>
    tpu.vector_store %arg4[%c0, %c0_0, %c0_1, %c0_2], %0 {strides = array<i32>} : memref<1x16x16x36xf32, #tpu.memory_space<vmem>>, vector<1x2x16x4xf32>,
    %cst_3 = arith.constant 0.000000e+00 : f32
    %2 = vector.broadcast %cst_3 : f32 to vector<1x14x2x4xf32>
    %c0_4 = arith.constant 0 : index
    %c2 = arith.constant 2 : index
    %c0_5 = arith.constant 0 : index
    %c0_6 = arith.constant 0 : index
    %3 = vector.load %arg4[%c0_4, %c2, %c0_5, %c0_6] : memref<1x16x16x36xf32, #tpu.memory_space<vmem>>, vector<1x14x2x4xf32>
    tpu.vector_store %arg4[%c0_4, %c2, %c0_5, %c0_6], %2 {strides = array<i32>} : memref<1x16x16x36xf32, #tpu.memory_space<vmem>>, vector<1x14x2x4xf32>,
    %c0_7 = arith.constant 0 : index
    %c0_8 = arith.constant 0 : index
    %c0_9 = arith.constant 0 : index
    %c0_10 = arith.constant 0 : index
    %4 = vector.load %arg1[%c0_7, %c0_8, %c0_9, %c0_10] : memref<1x16x16x4xf32, #tpu.memory_space<vmem>>, vector<1x14x14x4xf32>
    %c0_11 = arith.constant 0 : index
    %c2_12 = arith.constant 2 : index
    %c2_13 = arith.constant 2 : index
    %c0_14 = arith.constant 0 : index
    %5 = vector.load %arg4[%c0_11, %c2_12, %c2_13, %c0_14] : memref<1x16x16x36xf32, #tpu.memory_space<vmem>>, vector<1x14x14x4xf32>
    tpu.vector_store %arg4[%c0_11, %c2_12, %c2_13, %c0_14], %4 {strides = array<i32>} : memref<1x16x16x36xf32, #tpu.memory_space<vmem>>, vector<1x14x14x4xf32>,
    %cst_15 = arith.constant 0.000000e+00 : f32
    %6 = vector.broadcast %cst_15 : f32 to vector<1x2x16x4xf32>
    %c0_16 = arith.constant 0 : index
    %c0_17 = arith.constant 0 : index
    %c0_18 = arith.constant 0 : index
    %c4 = arith.constant 4 : index
    %7 = vector.load %arg4[%c0_16, %c0_17, %c0_18, %c4] : memref<1x16x16x36xf32, #tpu.memory_space<vmem>>, vector<1x2x16x4xf32>
    tpu.vector_store %arg4[%c0_16, %c0_17, %c0_18, %c4], %6 {strides = array<i32>} : memref<1x16x16x36xf32, #tpu.memory_space<vmem>>, vector<1x2x16x4xf32>,
    %c0_19 = arith.constant 0 : index
    %c0_20 = arith.constant 0 : index
    %c0_21 = arith.constant 0 : index
    %c0_22 = arith.constant 0 : index
    %8 = vector.load %arg1[%c0_19, %c0_20, %c0_21, %c0_22] : memref<1x16x16x4xf32, #tpu.memory_space<vmem>>, vector<1x14x16x4xf32>
    %c0_23 = arith.constant 0 : index
    %c2_24 = arith.constant 2 : index
    %c0_25 = arith.constant 0 : index
    %c4_26 = arith.constant 4 : index
    %9 = vector.load %arg4[%c0_23, %c2_24, %c0_25, %c4_26] : memref<1x16x16x36xf32, #tpu.memory_space<vmem>>, vector<1x14x16x4xf32>
    tpu.vector_store %arg4[%c0_23, %c2_24, %c0_25, %c4_26], %8 {strides = array<i32>} : memref<1x16x16x36xf32, #tpu.memory_space<vmem>>, vector<1x14x16x4xf32>,
    %cst_27 = arith.constant 0.000000e+00 : f32
    %10 = vector.broadcast %cst_27 : f32 to vector<1x2x16x4xf32>
    %c0_28 = arith.constant 0 : index
    %c0_29 = arith.constant 0 : index
    %c0_30 = arith.constant 0 : index
    %c8 = arith.constant 8 : index
    %11 = vector.load %arg4[%c0_28, %c0_29, %c0_30, %c8] : memref<1x16x16x36xf32, #tpu.memory_space<vmem>>, vector<1x2x16x4xf32>
    tpu.vector_store %arg4[%c0_28, %c0_29, %c0_30, %c8], %10 {strides = array<i32>} : memref<1x16x16x36xf32, #tpu.memory_space<vmem>>, vector<1x2x16x4xf32>,
    %cst_31 = arith.constant 0.000000e+00 : f32
    %12 = vector.broadcast %cst_31 : f32 to vector<1x14x2x4xf32>
    %c0_32 = arith.constant 0 : index
    %c2_33 = arith.constant 2 : index
    %c14 = arith.constant 14 : index
    %c8_34 = arith.constant 8 : index
    %13 = vector.load %arg4[%c0_32, %c2_33, %c14, %c8_34] : memref<1x16x16x36xf32, #tpu.memory_space<vmem>>, vector<1x14x2x4xf32>
    tpu.vector_store %arg4[%c0_32, %c2_33, %c14, %c8_34], %12 {strides = array<i32>} : memref<1x16x16x36xf32, #tpu.memory_space<vmem>>, vector<1x14x2x4xf32>,
    %c0_35 = arith.constant 0 : index
    %c0_36 = arith.constant 0 : index
    %c2_37 = arith.constant 2 : index
    %c0_38 = arith.constant 0 : index
    %14 = vector.load %arg1[%c0_35, %c0_36, %c2_37, %c0_38] : memref<1x16x16x4xf32, #tpu.memory_space<vmem>>, vector<1x14x14x4xf32>
    %c0_39 = arith.constant 0 : index
    %c2_40 = arith.constant 2 : index
    %c0_41 = arith.constant 0 : index
    %c8_42 = arith.constant 8 : index
    %15 = vector.load %arg4[%c0_39, %c2_40, %c0_41, %c8_42] : memref<1x16x16x36xf32, #tpu.memory_space<vmem>>, vector<1x14x14x4xf32>
    tpu.vector_store %arg4[%c0_39, %c2_40, %c0_41, %c8_42], %14 {strides = array<i32>} : memref<1x16x16x36xf32, #tpu.memory_space<vmem>>, vector<1x14x14x4xf32>,
    %cst_43 = arith.constant 0.000000e+00 : f32
    %16 = vector.broadcast %cst_43 : f32 to vector<1x16x2x4xf32>
    %c0_44 = arith.constant 0 : index
    %c0_45 = arith.constant 0 : index
    %c0_46 = arith.constant 0 : index
    %c12 = arith.constant 12 : index
    %17 = vector.load %arg4[%c0_44, %c0_45, %c0_46, %c12] : memref<1x16x16x36xf32, #tpu.memory_space<vmem>>, vector<1x16x2x4xf32>
    tpu.vector_store %arg4[%c0_44, %c0_45, %c0_46, %c12], %16 {strides = array<i32>} : memref<1x16x16x36xf32, #tpu.memory_space<vmem>>, vector<1x16x2x4xf32>,
    %c0_47 = arith.constant 0 : index
    %c0_48 = arith.constant 0 : index
    %c0_49 = arith.constant 0 : index
    %c0_50 = arith.constant 0 : index
    %18 = vector.load %arg1[%c0_47, %c0_48, %c0_49, %c0_50] : memref<1x16x16x4xf32, #tpu.memory_space<vmem>>, vector<1x16x14x4xf32>
    %c0_51 = arith.constant 0 : index
    %c0_52 = arith.constant 0 : index
    %c2_53 = arith.constant 2 : index
    %c12_54 = arith.constant 12 : index
    %19 = vector.load %arg4[%c0_51, %c0_52, %c2_53, %c12_54] : memref<1x16x16x36xf32, #tpu.memory_space<vmem>>, vector<1x16x14x4xf32>
    tpu.vector_store %arg4[%c0_51, %c0_52, %c2_53, %c12_54], %18 {strides = array<i32>} : memref<1x16x16x36xf32, #tpu.memory_space<vmem>>, vector<1x16x14x4xf32>,
    %c0_55 = arith.constant 0 : index
    %c0_56 = arith.constant 0 : index
    %c0_57 = arith.constant 0 : index
    %c0_58 = arith.constant 0 : index
    %20 = vector.load %arg1[%c0_55, %c0_56, %c0_57, %c0_58] : memref<1x16x16x4xf32, #tpu.memory_space<vmem>>, vector<1x16x16x4xf32>
    %c0_59 = arith.constant 0 : index
    %c0_60 = arith.constant 0 : index
    %c0_61 = arith.constant 0 : index
    %c16 = arith.constant 16 : index
    %21 = vector.load %arg4[%c0_59, %c0_60, %c0_61, %c16] : memref<1x16x16x36xf32, #tpu.memory_space<vmem>>, vector<1x16x16x4xf32>
    tpu.vector_store %arg4[%c0_59, %c0_60, %c0_61, %c16], %20 {strides = array<i32>} : memref<1x16x16x36xf32, #tpu.memory_space<vmem>>, vector<1x16x16x4xf32>,
    %cst_62 = arith.constant 0.000000e+00 : f32
    %22 = vector.broadcast %cst_62 : f32 to vector<1x16x2x4xf32>
    %c0_63 = arith.constant 0 : index
    %c0_64 = arith.constant 0 : index
    %c14_65 = arith.constant 14 : index
    %c20 = arith.constant 20 : index
    %23 = vector.load %arg4[%c0_63, %c0_64, %c14_65, %c20] : memref<1x16x16x36xf32, #tpu.memory_space<vmem>>, vector<1x16x2x4xf32>
    tpu.vector_store %arg4[%c0_63, %c0_64, %c14_65, %c20], %22 {strides = array<i32>} : memref<1x16x16x36xf32, #tpu.memory_space<vmem>>, vector<1x16x2x4xf32>,
    %c0_66 = arith.constant 0 : index
    %c0_67 = arith.constant 0 : index
    %c2_68 = arith.constant 2 : index
    %c0_69 = arith.constant 0 : index
    %24 = vector.load %arg1[%c0_66, %c0_67, %c2_68, %c0_69] : memref<1x16x16x4xf32, #tpu.memory_space<vmem>>, vector<1x16x14x4xf32>
    %c0_70 = arith.constant 0 : index
    %c0_71 = arith.constant 0 : index
    %c0_72 = arith.constant 0 : index
    %c20_73 = arith.constant 20 : index
    %25 = vector.load %arg4[%c0_70, %c0_71, %c0_72, %c20_73] : memref<1x16x16x36xf32, #tpu.memory_space<vmem>>, vector<1x16x14x4xf32>
    tpu.vector_store %arg4[%c0_70, %c0_71, %c0_72, %c20_73], %24 {strides = array<i32>} : memref<1x16x16x36xf32, #tpu.memory_space<vmem>>, vector<1x16x14x4xf32>,
    %cst_74 = arith.constant 0.000000e+00 : f32
    %26 = vector.broadcast %cst_74 : f32 to vector<1x2x16x4xf32>
    %c0_75 = arith.constant 0 : index
    %c14_76 = arith.constant 14 : index
    %c0_77 = arith.constant 0 : index
    %c24 = arith.constant 24 : index
    %27 = vector.load %arg4[%c0_75, %c14_76, %c0_77, %c24] : memref<1x16x16x36xf32, #tpu.memory_space<vmem>>, vector<1x2x16x4xf32>
    tpu.vector_store %arg4[%c0_75, %c14_76, %c0_77, %c24], %26 {strides = array<i32>} : memref<1x16x16x36xf32, #tpu.memory_space<vmem>>, vector<1x2x16x4xf32>,
    %cst_78 = arith.constant 0.000000e+00 : f32
    %28 = vector.broadcast %cst_78 : f32 to vector<1x14x2x4xf32>
    %c0_79 = arith.constant 0 : index
    %c0_80 = arith.constant 0 : index
    %c0_81 = arith.constant 0 : index
    %c24_82 = arith.constant 24 : index
    %29 = vector.load %arg4[%c0_79, %c0_80, %c0_81, %c24_82] : memref<1x16x16x36xf32, #tpu.memory_space<vmem>>, vector<1x14x2x4xf32>
    tpu.vector_store %arg4[%c0_79, %c0_80, %c0_81, %c24_82], %28 {strides = array<i32>} : memref<1x16x16x36xf32, #tpu.memory_space<vmem>>, vector<1x14x2x4xf32>,
    %c0_83 = arith.constant 0 : index
    %c2_84 = arith.constant 2 : index
    %c0_85 = arith.constant 0 : index
    %c0_86 = arith.constant 0 : index
    %30 = vector.load %arg1[%c0_83, %c2_84, %c0_85, %c0_86] : memref<1x16x16x4xf32, #tpu.memory_space<vmem>>, vector<1x14x14x4xf32>
    %c0_87 = arith.constant 0 : index
    %c0_88 = arith.constant 0 : index
    %c2_89 = arith.constant 2 : index
    %c24_90 = arith.constant 24 : index
    %31 = vector.load %arg4[%c0_87, %c0_88, %c2_89, %c24_90] : memref<1x16x16x36xf32, #tpu.memory_space<vmem>>, vector<1x14x14x4xf32>
    tpu.vector_store %arg4[%c0_87, %c0_88, %c2_89, %c24_90], %30 {strides = array<i32>} : memref<1x16x16x36xf32, #tpu.memory_space<vmem>>, vector<1x14x14x4xf32>,
    %cst_91 = arith.constant 0.000000e+00 : f32
    %32 = vector.broadcast %cst_91 : f32 to vector<1x2x16x4xf32>
    %c0_92 = arith.constant 0 : index
    %c14_93 = arith.constant 14 : index
    %c0_94 = arith.constant 0 : index
    %c28 = arith.constant 28 : index
    %33 = vector.load %arg4[%c0_92, %c14_93, %c0_94, %c28] : memref<1x16x16x36xf32, #tpu.memory_space<vmem>>, vector<1x2x16x4xf32>
    tpu.vector_store %arg4[%c0_92, %c14_93, %c0_94, %c28], %32 {strides = array<i32>} : memref<1x16x16x36xf32, #tpu.memory_space<vmem>>, vector<1x2x16x4xf32>,
    %c0_95 = arith.constant 0 : index
    %c2_96 = arith.constant 2 : index
    %c0_97 = arith.constant 0 : index
    %c0_98 = arith.constant 0 : index
    %34 = vector.load %arg1[%c0_95, %c2_96, %c0_97, %c0_98] : memref<1x16x16x4xf32, #tpu.memory_space<vmem>>, vector<1x14x16x4xf32>
    %c0_99 = arith.constant 0 : index
    %c0_100 = arith.constant 0 : index
    %c0_101 = arith.constant 0 : index
    %c28_102 = arith.constant 28 : index
    %35 = vector.load %arg4[%c0_99, %c0_100, %c0_101, %c28_102] : memref<1x16x16x36xf32, #tpu.memory_space<vmem>>, vector<1x14x16x4xf32>
    tpu.vector_store %arg4[%c0_99, %c0_100, %c0_101, %c28_102], %34 {strides = array<i32>} : memref<1x16x16x36xf32, #tpu.memory_space<vmem>>, vector<1x14x16x4xf32>,
    %cst_103 = arith.constant 0.000000e+00 : f32
    %36 = vector.broadcast %cst_103 : f32 to vector<1x2x16x4xf32>
    %c0_104 = arith.constant 0 : index
    %c14_105 = arith.constant 14 : index
    %c0_106 = arith.constant 0 : index
    %c32 = arith.constant 32 : index
    %37 = vector.load %arg4[%c0_104, %c14_105, %c0_106, %c32] : memref<1x16x16x36xf32, #tpu.memory_space<vmem>>, vector<1x2x16x4xf32>
    tpu.vector_store %arg4[%c0_104, %c14_105, %c0_106, %c32], %36 {strides = array<i32>} : memref<1x16x16x36xf32, #tpu.memory_space<vmem>>, vector<1x2x16x4xf32>,
    %cst_107 = arith.constant 0.000000e+00 : f32
    %38 = vector.broadcast %cst_107 : f32 to vector<1x14x2x4xf32>
    %c0_108 = arith.constant 0 : index
    %c0_109 = arith.constant 0 : index
    %c14_110 = arith.constant 14 : index
    %c32_111 = arith.constant 32 : index
    %39 = vector.load %arg4[%c0_108, %c0_109, %c14_110, %c32_111] : memref<1x16x16x36xf32, #tpu.memory_space<vmem>>, vector<1x14x2x4xf32>
    tpu.vector_store %arg4[%c0_108, %c0_109, %c14_110, %c32_111], %38 {strides = array<i32>} : memref<1x16x16x36xf32, #tpu.memory_space<vmem>>, vector<1x14x2x4xf32>,
    %c0_112 = arith.constant 0 : index
    %c2_113 = arith.constant 2 : index
    %c2_114 = arith.constant 2 : index
    %c0_115 = arith.constant 0 : index
    %40 = vector.load %arg1[%c0_112, %c2_113, %c2_114, %c0_115] : memref<1x16x16x4xf32, #tpu.memory_space<vmem>>, vector<1x14x14x4xf32>
    %c0_116 = arith.constant 0 : index
    %c0_117 = arith.constant 0 : index
    %c0_118 = arith.constant 0 : index
    %c32_119 = arith.constant 32 : index
    %41 = vector.load %arg4[%c0_116, %c0_117, %c0_118, %c32_119] : memref<1x16x16x36xf32, #tpu.memory_space<vmem>>, vector<1x14x14x4xf32>
    tpu.vector_store %arg4[%c0_116, %c0_117, %c0_118, %c32_119], %40 {strides = array<i32>} : memref<1x16x16x36xf32, #tpu.memory_space<vmem>>, vector<1x14x14x4xf32>,
    %c0_120 = arith.constant 0 : index
    %c0_121 = arith.constant 0 : index
    %c0_122 = arith.constant 0 : index
    %c0_123 = arith.constant 0 : index
    %42 = vector.load %arg4[%c0_120, %c0_121, %c0_122, %c0_123] : memref<1x16x16x36xf32, #tpu.memory_space<vmem>>, vector<1x16x16x36xf32>
    %43 = vector.shape_cast %42 : vector<1x16x16x36xf32> to vector<16x16x36xf32>
    %c0_124 = arith.constant 0 : index
    %c0_125 = arith.constant 0 : index
    %44 = vector.load %arg2[%c0_124, %c0_125] : memref<36x128xf32, #tpu.memory_space<vmem>>, vector<36x128xf32>
    %cst_126 = arith.constant dense<0.000000e+00> : vector<16x16x128xf32>
    %45 = tpu.matmul %43, %44, %cst_126 {dimension_numbers = #tpu.dot_dimension_numbers<[2], [0], [0, 1], [1], [0, 0, 0, 1, 1, 1], [], []>} : vector<16x16x36xf32>, vector<36x128xf32>, vector<16x16x128xf32> -> vector<16x16x128xf32>
    %c0_127 = arith.constant 0 : index
    %c0_128 = arith.constant 0 : index
    %c0_129 = arith.constant 0 : index
    %c0_130 = arith.constant 0 : index
    %46 = vector.load %arg3[%c0_127, %c0_128, %c0_129, %c0_130] : memref<1x16x16x128xf32, #tpu.memory_space<vmem>>, vector<1x16x16x128xf32>
    %47 = vector.shape_cast %46 : vector<1x16x16x128xf32> to vector<16x16x128xf32>
    %48 = vector.shape_cast %45 : vector<16x16x128xf32> to vector<1x16x16x128xf32>
    tpu.vector_store %arg3[%c0_127, %c0_128, %c0_129, %c0_130], %48 {strides = array<i32>} : memref<1x16x16x128xf32, #tpu.memory_space<vmem>>, vector<1x16x16x128xf32>,
    return
  }
  func.func @transform_0(%arg0: i32) -> (i32, i32, i32, i32) {
    %c0_i32 = arith.constant 0 : i32
    %c0_i32_0 = arith.constant 0 : i32
    %c0_i32_1 = arith.constant 0 : i32
    %c0_i32_2 = arith.constant 0 : i32
    return %arg0, %c0_i32, %c0_i32_0, %c0_i32_1 : i32, i32, i32, i32
  }
  func.func @transform_1(%arg0: i32) -> (i32, i32) {
    %c0_i32 = arith.constant 0 : i32
    %c0_i32_0 = arith.constant 0 : i32
    %c0_i32_1 = arith.constant 0 : i32
    return %c0_i32, %c0_i32_0 : i32, i32
  }
  func.func @transform_2(%arg0: i32) -> (i32, i32, i32, i32) {
    %c0_i32 = arith.constant 0 : i32
    %c0_i32_0 = arith.constant 0 : i32
    %c0_i32_1 = arith.constant 0 : i32
    %c0_i32_2 = arith.constant 0 : i32
    return %arg0, %c0_i32, %c0_i32_0, %c0_i32_1 : i32, i32, i32, i32
  }
}

</mosaic_0001>

<bundles_post_ra>
// kernel: tpu_custom_call.1
= control target key start
LH: loop header
LB: loop body
LE: loop exit
PB: predicated region body
PF: predicated region fallthrough
CT: control target
= control target key end

     0   :  { %7 = vsyncpa [#allocation4], 0  ;;  %s3935_s0 = inlined_call_operand.vmem [shape: f32[2,16,16,4], index: 0, kind: input, shape index: {}]   ;;  %s3936_s1 = inlined_call_operand.vmem [shape: f32[36,128], index: 1, kind: input, shape index: {}]   ;;  %s3937_s2 = inlined_call_operand.hbm [shape: f32[2,16,16,128], index: 2, kind: output, shape index: {}]  }
   0x1   :  { %9 = vsyncpa [#allocation4 + $0x1], 0  ;;  %s2594_s9 = smov 0   ;;  %s2596_s10 = smov 0  }
   0x2   :  { %s2598_s11 = smov 0   ;;  %s2600_s12 = smov 0  }
   0x3 LB: > { %s2615_s13 = sadd.s32 4294967295, %s2566_s12   ;;  %s2221_s14 = sadd.s32 4294967294, %s2566_s12   ;;  %s2566_s12 = sphi %s2600_s12, %s3943_s12   ;;  %s2562_s11 = sphi %s2598_s11, %s3942_s11   ;;  %s2558_s10 = sphi %s2596_s10, %s3941_s10   ;;  %s2554_s9 = sphi %s2594_s9, %s3940_s9  }
   0x4   : > { %s2619_s15 = sadd.s32 1, %s2566_s12   ;;  %s69_s16 = sadd.s32 1, %s2562_s11 }
   0x5   : > { %s66_s17 = ssub.s32 %s2566_s12, %s2619_s15  ;;  %p79_p0 = scmp.ne.s32.totalorder %s2562_s11, %s2558_s10 }
   0x6   : > { %p67_p1 = scmp.eq.s32.totalorder %s66_s17, 0  ;;  %p80_p2 = scmp.eq.s32.totalorder %s2615_s13, 1 }
   0x7   : > { %p85_p3 = scmp.ne.s32.totalorder %s2558_s10, %s2554_s9  ;;  %p86_p4 = scmp.eq.s32.totalorder %s2221_s14, 1 }
   0x8   : > { %s2630_s18 = scalar_select %p67_p1, %s2562_s11, %s69_s16  }
   0x9   : > { %p2632_p5 = por %p80_p2, %p79_p0  ;;  %p2636_p6 = por %p86_p4, %p85_p3 }
   0xa   : > { %p2224_p7 = scmp.ge.s32.totalorder %s2566_s12, 1  ;;  %p115_p8 = scmp.lt.s32.totalorder %s2566_s12, 3 }
   0xc   : > { %p116_p9 = pnand %p2224_p7, %p115_p8 }
   0xd   : > { %p137_p10 = scmp.lt.s32.totalorder (!%p116_p9), %s2615_s13, 1  ;;  %s2569_s26 = smov (!%p116_p9), 4  }
   0xe   : > { %119 = sbr.rel (%p116_p9) target bundleno = 826 (0x33a), region = 28  ;;  %s2570_s27 = smov (!%p116_p9), 8  }
   0xf   : > { %s2571_s28 = smov (!%p116_p9), 12   ;;  %s2572_s29 = smov (!%p116_p9), 16  }
  0x10   : > { %s2573_s30 = smov (!%p116_p9), 20   ;;  %s2574_s3 = smov (!%p116_p9), 24  }
  0x11   : > { %s2575_s4 = smov (!%p116_p9), 28   ;;  %s2576_s14 = smov (!%p116_p9), 32  }
  0x13   : > { %vm142_vm0 = vcmask 31744   ;;  %vm148_vm1 = vcmask 25600   ;;  %v2568_v0 = vmov 0.0   ;;  %vm220_vm2 = vcmask 64544   ;;  %s138_s21 = scalar_select %p137_p10, %s2615_s13, 1 }
  0x14   : > { %150 = vst.msk [vmem:[#allocation2 + $0x30] sm:$0x3] %vm148_vm1, %v2568_v0  ;;  %149 = vst.msk [vmem:[#allocation2 + $0x20] sm:$0x3] %vm148_vm1, %v2568_v0  ;;  %vm192_vm3 = vcmask 29696   ;;  %vm393_vm4 = vcmask 97344  }
  0x15   : > { %143 = vst.msk [vmem:[#allocation2] sm:$0xff] %vm142_vm0, %v2568_v0  ;;  %144 = vst.msk [vmem:[#allocation2 + $0x8] sm:$0xff] %vm142_vm0, %v2568_v0  ;;  %s2350_s22 = sshll.u32 %s138_s21, 8  ;;  %vm582_vm5 = vcmask 124000   ;;  %vm398_vm6 = vcmask 91200   ;;  %vm554_vm7 = vcmask 95296  }
  0x16   : > { %145 = vst.msk [vmem:[#allocation2 + $0x10] sm:$0xff] %vm142_vm0, %v2568_v0  ;;  %146 = vst.msk [vmem:[#allocation2 + $0x18] sm:$0xff] %vm142_vm0, %v2568_v0  ;;  %s2693_s25 = scalar_lea.vmem %s3935_s0, %s2350_s22  ;;  %vm1884_vm8 = vcmask 1043456   ;;  %vm761_vm9 = vcmask 128096   ;;  %vm759_vm10 = vcmask 130144   ;;  %vm953_vm11 = vcmask 162944  }
  0x17   : > { %151 = vst.msk [vmem:[#allocation2 + $0x40] sm:$0x3] %vm148_vm1, %v2568_v0  ;;  %152 = vst.msk [vmem:[#allocation2 + $0x50] sm:$0x3] %vm148_vm1, %v2568_v0  ;;  %v2696_v1 = vld [vmem:[%s2693_s25 + $0x10] sm:$0xff]  ;;  %v2699_v2 = vld [vmem:[%s2693_s25] sm:$0xff] }
  0x18   : > { %153 = vst.msk [vmem:[#allocation2 + $0x60] sm:$0x3] %vm148_vm1, %v2568_v0  ;;  %154 = vst.msk [vmem:[#allocation2 + $0x70] sm:$0x3] %vm148_vm1, %v2568_v0  ;;  %285 = vrot.lane.b32.xlu1 %v2696_v1, %s2569_s26  ;;  %281 = vrot.lane.b32.xlu0 %v2699_v2, %s2569_s26  ;;  %v2706_v3 = vld [vmem:[%s2693_s25 + $0x18] sm:$0xff]  ;;  %v2713_v4 = vld [vmem:[%s2693_s25 + $0x8] sm:$0xff] }
  0x19   : > { %155 = vst.msk [vmem:[#allocation2 + $0x80] sm:$0x3] %vm148_vm1, %v2568_v0  ;;  %156 = vst.msk [vmem:[#allocation2 + $0x90] sm:$0x3] %vm148_vm1, %v2568_v0  ;;  %v2716_v5 = vld [vmem:[%s2693_s25 + $0x20] sm:$0xff]  ;;  %v2719_v6 = vld [vmem:[%s2693_s25 + $0x30] sm:$0xff] }
  0x1a   : > { %157 = vst.msk [vmem:[#allocation2 + $0xa0] sm:$0x3] %vm148_vm1, %v2568_v0  ;;  %158 = vst.msk [vmem:[#allocation2 + $0xb0] sm:$0x3] %vm148_vm1, %v2568_v0  ;;  %v2722_v7 = vld [vmem:[%s2693_s25 + $0x40] sm:$0xff]  ;;  %v2729_v8 = vld [vmem:[%s2693_s25 + $0x50] sm:$0xff] }
  0x1b   : > { %159 = vst.msk [vmem:[#allocation2 + $0xc0] sm:$0x3] %vm148_vm1, %v2568_v0  ;;  %160 = vst.msk [vmem:[#allocation2 + $0xd0] sm:$0x3] %vm148_vm1, %v2568_v0  ;;  %v2732_v9 = vld [vmem:[%s2693_s25 + $0x60] sm:$0xff]  ;;  %v2741_v10 = vld [vmem:[%s2693_s25 + $0x70] sm:$0xff] }
  0x1c   : > { %161 = vst.msk [vmem:[#allocation2 + $0xe0] sm:$0x3] %vm148_vm1, %v2568_v0  ;;  %162 = vst.msk [vmem:[#allocation2 + $0xf0] sm:$0x3] %vm148_vm1, %v2568_v0  ;;  %287 = vrot.lane.b32.xlu1 %v2706_v3, %s2569_s26  ;;  %283 = vrot.lane.b32.xlu0 %v2713_v4, %s2569_s26  ;;  %v2748_v11 = vld [vmem:[%s2693_s25 + $0x28] sm:$0xff]  ;;  %v2751_v12 = vld [vmem:[%s2693_s25 + $0x80] sm:$0xff] }
  0x1d   : > { %221 = vst.msk [vmem:[#allocation2] sm:$0xff] %vm220_vm2, %v2568_v0  ;;  %222 = vst.msk [vmem:[#allocation2 + $0x8] sm:$0xff] %vm220_vm2, %v2568_v0  ;;  %v2756_v13 = vld [vmem:[%s2693_s25 + $0x90] sm:$0xff]  ;;  %v2759_v14 = vld [vmem:[%s2693_s25 + $0xa0] sm:$0xff]  ;;  %vm986_vm12 = vcmask 189600   ;;  %vm1165_vm13 = vcmask 193696  }
  0x1e   : > { %223 = vst.msk [vmem:[#allocation2 + $0x10] sm:$0xff] %vm220_vm2, %v2568_v0  ;;  %224 = vst.msk [vmem:[#allocation2 + $0x18] sm:$0xff] %vm220_vm2, %v2568_v0  ;;  %v2764_v15 = vld [vmem:[%s2693_s25 + $0xb0] sm:$0xff]  ;;  %v2775_v16 = vld [vmem:[%s2693_s25 + $0xc0] sm:$0xff]  ;;  %vm1163_vm14 = vcmask 195744   ;;  %vm1203_vm15 = vcmask 222400  }
  0x1f   : > { %194 = vst.msk [vmem:[#allocation2 + $0x32] sm:$0xff] %vm142_vm0, %v2696_v1  ;;  %191 = vst.msk [vmem:[#allocation2 + $0x22] sm:$0xff] %vm142_vm0, %v2699_v2  ;;  %v2780_v17 = vld [vmem:[%s2693_s25 + $0x38] sm:$0xff]  ;;  %v2783_v18 = vld [vmem:[%s2693_s25 + $0xd0] sm:$0xff]  ;;  %vm1360_vm1 = vcmask 226496  }
  0x20   : > { %196 = vst.msk [vmem:[#allocation2 + $0x42] sm:$0xff] %vm142_vm0, %v2716_v5  ;;  %198 = vst.msk [vmem:[#allocation2 + $0x52] sm:$0xff] %vm142_vm0, %v2719_v6  ;;  %291 = vrot.lane.b32.xlu1 %v2748_v11, %s2569_s26  ;;  %289 = vrot.lane.b32.xlu0 %v2716_v5, %s2569_s26  ;;  %v234_v19 = vld [vmem:[%s2693_s25 + $0x48] sm:$0xff]  ;;  %v236_v20 = vld [vmem:[%s2693_s25 + $0x58] sm:$0xff] }
  0x21   : > { %200 = vst.msk [vmem:[#allocation2 + $0x62] sm:$0xff] %vm142_vm0, %v2722_v7  ;;  %202 = vst.msk [vmem:[#allocation2 + $0x72] sm:$0xff] %vm142_vm0, %v2729_v8  ;;  %v166_v21 = vld [vmem:[%s2693_s25 + $0x18] sm:$0x3f]  ;;  %v164_v22 = vld [vmem:[%s2693_s25 + $0x8] sm:$0x3f] }
  0x22   : > { %204 = vst.msk [vmem:[#allocation2 + $0x82] sm:$0xff] %vm142_vm0, %v2732_v9  ;;  %206 = vst.msk [vmem:[#allocation2 + $0x92] sm:$0xff] %vm142_vm0, %v2741_v10  ;;  %v238_v23 = vld [vmem:[%s2693_s25 + $0x68] sm:$0xff]  ;;  %v170_v25 = vld [vmem:[%s2693_s25 + $0x38] sm:$0x3f] }
  0x23   : > { %208 = vst.msk [vmem:[#allocation2 + $0xa2] sm:$0xff] %vm142_vm0, %v2751_v12  ;;  %210 = vst.msk [vmem:[#allocation2 + $0xb2] sm:$0xff] %vm142_vm0, %v2756_v13  ;;  %v168_v24 = vld [vmem:[%s2693_s25 + $0x28] sm:$0x3f]  ;;  %v174_v27 = vld [vmem:[%s2693_s25 + $0x58] sm:$0x3f] }
  0x24   : > { %212 = vst.msk [vmem:[#allocation2 + $0xc2] sm:$0xff] %vm142_vm0, %v2759_v14  ;;  %214 = vst.msk [vmem:[#allocation2 + $0xd2] sm:$0xff] %vm142_vm0, %v2764_v15  ;;  %295 = vrot.lane.b32.xlu1 %v2780_v17, %s2569_s26  ;;  %293 = vrot.lane.b32.xlu0 %v2719_v6, %s2569_s26  ;;  %v172_v26 = vld [vmem:[%s2693_s25 + $0x48] sm:$0x3f]  ;;  %v240_v29 = vld [vmem:[%s2693_s25 + $0x78] sm:$0xff] }
  0x25   : > { %216 = vst.msk [vmem:[#allocation2 + $0xe2] sm:$0xff] %vm142_vm0, %v2775_v16  ;;  %218 = vst.msk [vmem:[#allocation2 + $0xf2] sm:$0xff] %vm142_vm0, %v2783_v18  ;;  %v176_v28 = vld [vmem:[%s2693_s25 + $0x68] sm:$0x3f]  ;;  %v178_v30 = vld [vmem:[%s2693_s25 + $0x78] sm:$0x3f] }
  0x26   : > { %195 = vst.msk [vmem:[#allocation2 + $0x3a] sm:$0x3f] %vm192_vm3, %v166_v21  ;;  %193 = vst.msk [vmem:[#allocation2 + $0x2a] sm:$0x3f] %vm192_vm3, %v164_v22  ;;  %v180_v31 = vld [vmem:[%s2693_s25 + $0x88] sm:$0x3f] }
  0x27   : > { %197 = vst.msk [vmem:[#allocation2 + $0x4a] sm:$0x3f] %vm192_vm3, %v168_v24  ;;  %199 = vst.msk [vmem:[#allocation2 + $0x5a] sm:$0x3f] %vm192_vm3, %v170_v25  ;;  %v182_v32 = vld [vmem:[%s2693_s25 + $0x98] sm:$0x3f] }
  0x28   : > { %299 = vrot.lane.b32.xlu1 %v234_v19, %s2569_s26  ;;  %297 = vrot.lane.b32.xlu0 %v2722_v7, %s2569_s26  ;;  %201 = vst.msk [vmem:[#allocation2 + $0x6a] sm:$0x3f] %vm192_vm3, %v172_v26  ;;  %203 = vst.msk [vmem:[#allocation2 + $0x7a] sm:$0x3f] %vm192_vm3, %v174_v27  ;;  %v184_v33 = vld [vmem:[%s2693_s25 + $0xa8] sm:$0x3f] }
  0x29   : > { %205 = vst.msk [vmem:[#allocation2 + $0x8a] sm:$0x3f] %vm192_vm3, %v176_v28  ;;  %207 = vst.msk [vmem:[#allocation2 + $0x9a] sm:$0x3f] %vm192_vm3, %v178_v30  ;;  %v2832_v34 = vld [vmem:[%s2693_s25 + $0x88] sm:$0xff]  ;;  %v2841_v36 = vld [vmem:[%s2693_s25 + $0x98] sm:$0xff] }
  0x2a   : > { %209 = vst.msk [vmem:[#allocation2 + $0xaa] sm:$0x3f] %vm192_vm3, %v180_v31  ;;  %211 = vst.msk [vmem:[#allocation2 + $0xba] sm:$0x3f] %vm192_vm3, %v182_v32  ;;  %v186_v35 = vld [vmem:[%s2693_s25 + $0xb8] sm:$0x3f] }
  0x2b   : > { %213 = vst.msk [vmem:[#allocation2 + $0xca] sm:$0x3f] %vm192_vm3, %v184_v33  ;;  %215 = vst.msk [vmem:[#allocation2 + $0xda] sm:$0x3f] %vm192_vm3, %v186_v35  ;;  %v188_v37 = vld [vmem:[%s2693_s25 + $0xc8] sm:$0x3f] }
  0x2c   : > { %303 = vrot.lane.b32.xlu1 %v236_v20, %s2569_s26  ;;  %301 = vrot.lane.b32.xlu0 %v2729_v8, %s2569_s26  ;;  %217 = vst.msk [vmem:[#allocation2 + $0xea] sm:$0x3f] %vm192_vm3, %v188_v37  ;;  %v2850_v38 = vld [vmem:[%s2693_s25 + $0xa8] sm:$0xff]  ;;  %v190_v39 = vld [vmem:[%s2693_s25 + $0xd8] sm:$0x3f]  ;;  %vm1198_vm0 = vcmask 228544  }
  0x2d   : > { %219 = vst.msk [vmem:[#allocation2 + $0xfa] sm:$0x3f] %vm192_vm3, %v190_v39  ;;  %v2859_v40 = vld [vmem:[%s2693_s25 + $0xb8] sm:$0xff]  ;;  %v250_v41 = vld [vmem:[%s2693_s25 + $0xc8] sm:$0xff]  ;;  %vm1566_vm3 = vcmask 288000  }
  0x2e   : > { %394 = vst.msk [vmem:[#allocation2] sm:$0xff] %vm393_vm4, %v2568_v0  ;;  %395 = vst.msk [vmem:[#allocation2 + $0x8] sm:$0xff] %vm393_vm4, %v2568_v0  ;;  %v252_v42 = vld [vmem:[%s2693_s25 + $0xd8] sm:$0xff]  ;;  %v414_v43 = vld [vmem:[%s2693_s25 + $0xa] sm:$0x3f] }
  0x2f   : > { %396 = vst.msk [vmem:[#allocation2 + $0x10] sm:$0xff] %vm393_vm4, %v2568_v0  ;;  %397 = vst.msk [vmem:[#allocation2 + $0x18] sm:$0xff] %vm393_vm4, %v2568_v0  ;;  %v2887_v44 = vld [vmem:[%s2693_s25 + $0x2] sm:$0xff]  ;;  %v416_v45 = vld [vmem:[%s2693_s25 + $0x1a] sm:$0x3f] }
  0x30   : > { %307 = vrot.lane.b32.xlu1 %v238_v23, %s2569_s26  ;;  %305 = vrot.lane.b32.xlu0 %v2732_v9, %s2569_s26  ;;  %583 = vst.msk [vmem:[#allocation2] sm:$0x3] %vm582_vm5, %v2568_v0  ;;  %584 = vst.msk [vmem:[#allocation2 + $0x10] sm:$0x3] %vm582_vm5, %v2568_v0  ;;  %v2894_v46 = vld [vmem:[%s2693_s25 + $0x12] sm:$0xff]  ;;  %v2901_v48 = vld [vmem:[%s2693_s25 + $0x22] sm:$0xff] }
  0x31   : > { %v418_v47 = vld [vmem:[%s2693_s25 + $0x2a] sm:$0x3f]  ;;  %v420_v49 = vld [vmem:[%s2693_s25 + $0x3a] sm:$0x3f]  ;;  %v2908_v50 = vld [vmem:[%s2693_s25 + $0x32] sm:$0xff] }
  0x32   : > { %v422_v51 = vld [vmem:[%s2693_s25 + $0x4a] sm:$0x3f]  ;;  %v421_v52 = vld [vmem:[%s2693_s25 + $0x42] sm:$0xff]  ;;  %v424_v53 = vld [vmem:[%s2693_s25 + $0x5a] sm:$0x3f] }
  0x33   : > { %v423_v54 = vld [vmem:[%s2693_s25 + $0x52] sm:$0xff]  ;;  %v426_v55 = vld [vmem:[%s2693_s25 + $0x6a] sm:$0x3f]  ;;  %v425_v56 = vld [vmem:[%s2693_s25 + $0x62] sm:$0xff] }
  0x34   : > { %311 = vrot.lane.b32.xlu1 %v240_v29, %s2569_s26  ;;  %309 = vrot.lane.b32.xlu0 %v2741_v10, %s2569_s26  ;;  %v428_v57 = vld [vmem:[%s2693_s25 + $0x7a] sm:$0x3f]  ;;  %v427_v58 = vld [vmem:[%s2693_s25 + $0x72] sm:$0xff] }
  0x35   : > { %v430_v59 = vld [vmem:[%s2693_s25 + $0x8a] sm:$0x3f]  ;;  %v2931_v60 = vld [vmem:[%s2693_s25 + $0x82] sm:$0xff]  ;;  %v432_v61 = vld [vmem:[%s2693_s25 + $0x9a] sm:$0x3f] }
  0x36   : > { %v2938_v62 = vld [vmem:[%s2693_s25 + $0x92] sm:$0xff]  ;;  %v434_v63 = vld [vmem:[%s2693_s25 + $0xaa] sm:$0x3f]  ;;  %v2945_v19 = vld [vmem:[%s2693_s25 + $0xa2] sm:$0xff] }
  0x37   : > { %v436_v20 = vld [vmem:[%s2693_s25 + $0xba] sm:$0x3f]  ;;  %v2952_v21 = vld [vmem:[%s2693_s25 + $0xb2] sm:$0xff]  ;;  %v438_v22 = vld [vmem:[%s2693_s25 + $0xca] sm:$0x3f] }
  0x38   : > { %315 = vrot.lane.b32.xlu1 %v2832_v34, %s2569_s26  ;;  %313 = vrot.lane.b32.xlu0 %v2751_v12, %s2569_s26  ;;  %v2959_v23 = vld [vmem:[%s2693_s25 + $0xc2] sm:$0xff]  ;;  %v440_v24 = vld [vmem:[%s2693_s25 + $0xda] sm:$0x3f] }
  0x39   : > { %v439_v25 = vld [vmem:[%s2693_s25 + $0xd2] sm:$0xff]  ;;  %v600_v26 = vld [vmem:[%s2693_s25 + $0x8] sm:$0x3f] }
  0x3a   : > { %v602_v27 = vld [vmem:[%s2693_s25 + $0x18] sm:$0x3f]  ;;  %v604_v30 = vld [vmem:[%s2693_s25 + $0x28] sm:$0x3f] }
  0x3b   : > { %v606_v33 = vld [vmem:[%s2693_s25 + $0x38] sm:$0x3f]  ;;  %v608_v39 = vld [vmem:[%s2693_s25 + $0x48] sm:$0x3f] }
  0x3c   : > { %319 = vrot.lane.b32.xlu1 %v2841_v36, %s2569_s26  ;;  %317 = vrot.lane.b32.xlu0 %v2756_v13, %s2569_s26 }
  0x40   : > { %323 = vrot.lane.b32.xlu1 %v2850_v38, %s2569_s26  ;;  %321 = vrot.lane.b32.xlu0 %v2759_v14, %s2569_s26 }
  0x44   : > { %327 = vrot.lane.b32.xlu1 %v2859_v40, %s2569_s26  ;;  %325 = vrot.lane.b32.xlu0 %v2764_v15, %s2569_s26 }
  0x48   : > { %331 = vrot.lane.b32.xlu1 %v250_v41, %s2569_s26  ;;  %329 = vrot.lane.b32.xlu0 %v2775_v16, %s2569_s26 }
  0x4c   : > { %335 = vrot.lane.b32.xlu1 %v252_v42, %s2569_s26  ;;  %333 = vrot.lane.b32.xlu0 %v2783_v18, %s2569_s26 }
  0x50   : > { %471 = vrot.lane.b32.xlu1 %v414_v43, %s2570_s27  ;;  %469 = vrot.lane.b32.xlu0 %v2887_v44, %s2570_s27  ;;  %v610_v43 = vld [vmem:[%s2693_s25 + $0x58] sm:$0x3f] }
  0x54   : > { %475 = vrot.lane.b32.xlu1 %v416_v45, %s2570_s27  ;;  %473 = vrot.lane.b32.xlu0 %v2894_v46, %s2570_s27 }
  0x58   : > { %479 = vrot.lane.b32.xlu1 %v418_v47, %s2570_s27  ;;  %477 = vrot.lane.b32.xlu0 %v2901_v48, %s2570_s27 }
  0x5c   : > { %483 = vrot.lane.b32.xlu1 %v420_v49, %s2570_s27  ;;  %481 = vrot.lane.b32.xlu0 %v2908_v50, %s2570_s27  ;;  %v612_v49 = vld [vmem:[%s2693_s25 + $0x68] sm:$0x3f] }
  0x60   : > { %487 = vrot.lane.b32.xlu1 %v422_v51, %s2570_s27  ;;  %485 = vrot.lane.b32.xlu0 %v421_v52, %s2570_s27  ;;  %v614_v52 = vld [vmem:[%s2693_s25 + $0x78] sm:$0x3f] }
  0x64   : > { %491 = vrot.lane.b32.xlu1 %v424_v53, %s2570_s27  ;;  %489 = vrot.lane.b32.xlu0 %v423_v54, %s2570_s27  ;;  %v616_v54 = vld [vmem:[%s2693_s25 + $0x88] sm:$0x3f] }
  0x68   : > { %495 = vrot.lane.b32.xlu1 %v426_v55, %s2570_s27  ;;  %493 = vrot.lane.b32.xlu0 %v425_v56, %s2570_s27  ;;  %v618_v56 = vld [vmem:[%s2693_s25 + $0x98] sm:$0x3f] }
  0x6c   : > { %499 = vrot.lane.b32.xlu1 %v428_v57, %s2570_s27  ;;  %497 = vrot.lane.b32.xlu0 %v427_v58, %s2570_s27  ;;  %v620_v58 = vld [vmem:[%s2693_s25 + $0xa8] sm:$0x3f] }
  0x70   : > { %503 = vrot.lane.b32.xlu1 %v430_v59, %s2570_s27  ;;  %501 = vrot.lane.b32.xlu0 %v2931_v60, %s2570_s27 }
  0x74   : > { %507 = vrot.lane.b32.xlu1 %v432_v61, %s2570_s27  ;;  %505 = vrot.lane.b32.xlu0 %v2938_v62, %s2570_s27 }
  0x78   : > { %511 = vrot.lane.b32.xlu1 %v434_v63, %s2570_s27  ;;  %509 = vrot.lane.b32.xlu0 %v2945_v19, %s2570_s27  ;;  %v622_v63 = vld [vmem:[%s2693_s25 + $0xb8] sm:$0x3f] }
  0x7c   : > { %515 = vrot.lane.b32.xlu1 %v436_v20, %s2570_s27  ;;  %513 = vrot.lane.b32.xlu0 %v2952_v21, %s2570_s27 }
  0x80   : > { %519 = vrot.lane.b32.xlu1 %v438_v22, %s2570_s27  ;;  %517 = vrot.lane.b32.xlu0 %v2959_v23, %s2570_s27 }
  0x84   : > { %523 = vrot.lane.b32.xlu1 %v440_v24, %s2570_s27  ;;  %521 = vrot.lane.b32.xlu0 %v439_v25, %s2570_s27  ;;  %v624_v24 = vld [vmem:[%s2693_s25 + $0xc8] sm:$0x3f] }
  0x88   : > { %665 = vrot.lane.b32.xlu1 %v600_v26, %s2571_s28  ;;  %663 = vrot.lane.b32.xlu0 %v2699_v2, %s2571_s28 }
  0x8a   : > { %v286_v28 = vpop.permute.xlu1 %285  ;;  %v282_v29 = vpop.permute.xlu0 %281 }
  0x8b   : > { %367 = vst.msk [vmem:[#allocation2 + $0x30] sm:$0xff] %vm220_vm2, %v286_v28  ;;  %365 = vst.msk [vmem:[#allocation2 + $0x20] sm:$0xff] %vm220_vm2, %v282_v29 }
  0x8c   : > { %669 = vrot.lane.b32.xlu1 %v602_v27, %s2571_s28  ;;  %667 = vrot.lane.b32.xlu0 %v2696_v1, %s2571_s28  ;;  %v626_v27 = vld [vmem:[%s2693_s25 + $0xd8] sm:$0x3f] }
  0x8e   : > { %v288_v31 = vpop.permute.xlu1 %287  ;;  %v284_v32 = vpop.permute.xlu0 %283 }
  0x8f   : > { %368 = vst.msk [vmem:[#allocation2 + $0x38] sm:$0xff] %vm220_vm2, %v288_v31  ;;  %366 = vst.msk [vmem:[#allocation2 + $0x28] sm:$0xff] %vm220_vm2, %v284_v32  ;;  %v3078_v31 = vld [vmem:[%s2693_s25 + $0xe0] sm:$0xff] }
  0x90   : > { %400 = vst.msk [vmem:[#allocation2 + $0x3e] sm:$0x3] %vm398_vm6, %v2568_v0  ;;  %399 = vst.msk [vmem:[#allocation2 + $0x2e] sm:$0x3] %vm398_vm6, %v2568_v0  ;;  %673 = vrot.lane.b32.xlu1 %v604_v30, %s2571_s28  ;;  %671 = vrot.lane.b32.xlu0 %v2716_v5, %s2571_s28  ;;  %v628_v30 = vld [vmem:[%s2693_s25 + $0xe8] sm:$0x3f] }
  0x92   : > { %v292_v35 = vpop.permute.xlu1 %291  ;;  %v290_v37 = vpop.permute.xlu0 %289 }
  0x93   : > { %370 = vst.msk [vmem:[#allocation2 + $0x48] sm:$0xff] %vm220_vm2, %v292_v35  ;;  %369 = vst.msk [vmem:[#allocation2 + $0x40] sm:$0xff] %vm220_vm2, %v290_v37  ;;  %v630_v35 = vld [vmem:[%s2693_s25 + $0xf8] sm:$0x3f] }
  0x94   : > { %401 = vst.msk [vmem:[#allocation2 + $0x4e] sm:$0x3] %vm398_vm6, %v2568_v0  ;;  %677 = vrot.lane.b32.xlu1 %v606_v33, %s2571_s28  ;;  %675 = vrot.lane.b32.xlu0 %v2719_v6, %s2571_s28 }
  0x96   : > { %v296_v41 = vpop.permute.xlu1 %295  ;;  %v294_v42 = vpop.permute.xlu0 %293 }
  0x97   : > { %372 = vst.msk [vmem:[#allocation2 + $0x58] sm:$0xff] %vm220_vm2, %v296_v41  ;;  %371 = vst.msk [vmem:[#allocation2 + $0x50] sm:$0xff] %vm220_vm2, %v294_v42 }
  0x98   : > { %402 = vst.msk [vmem:[#allocation2 + $0x5e] sm:$0x3] %vm398_vm6, %v2568_v0  ;;  %681 = vrot.lane.b32.xlu1 %v608_v39, %s2571_s28  ;;  %679 = vrot.lane.b32.xlu0 %v2722_v7, %s2571_s28 }
  0x9a   : > { %v300_v45 = vpop.permute.xlu1 %299  ;;  %v298_v47 = vpop.permute.xlu0 %297 }
  0x9b   : > { %374 = vst.msk [vmem:[#allocation2 + $0x68] sm:$0xff] %vm220_vm2, %v300_v45  ;;  %373 = vst.msk [vmem:[#allocation2 + $0x60] sm:$0xff] %vm220_vm2, %v298_v47 }
  0x9c   : > { %403 = vst.msk [vmem:[#allocation2 + $0x6e] sm:$0x3] %vm398_vm6, %v2568_v0  ;;  %685 = vrot.lane.b32.xlu1 %v610_v43, %s2571_s28  ;;  %683 = vrot.lane.b32.xlu0 %v2729_v8, %s2571_s28 }
  0x9e   : > { %v304_v51 = vpop.permute.xlu1 %303  ;;  %v302_v7 = vpop.permute.xlu0 %301 }
  0x9f   : > { %376 = vst.msk [vmem:[#allocation2 + $0x78] sm:$0xff] %vm220_vm2, %v304_v51  ;;  %375 = vst.msk [vmem:[#allocation2 + $0x70] sm:$0xff] %vm220_vm2, %v302_v7 }
  0xa0   : > { %404 = vst.msk [vmem:[#allocation2 + $0x7e] sm:$0x3] %vm398_vm6, %v2568_v0  ;;  %689 = vrot.lane.b32.xlu1 %v612_v49, %s2571_s28  ;;  %687 = vrot.lane.b32.xlu0 %v2732_v9, %s2571_s28 }
  0xa2   : > { %v308_v53 = vpop.permute.xlu1 %307  ;;  %v306_v8 = vpop.permute.xlu0 %305 }
  0xa3   : > { %378 = vst.msk [vmem:[#allocation2 + $0x88] sm:$0xff] %vm220_vm2, %v308_v53  ;;  %377 = vst.msk [vmem:[#allocation2 + $0x80] sm:$0xff] %vm220_vm2, %v306_v8 }
  0xa4   : > { %405 = vst.msk [vmem:[#allocation2 + $0x8e] sm:$0x3] %vm398_vm6, %v2568_v0  ;;  %693 = vrot.lane.b32.xlu1 %v614_v52, %s2571_s28  ;;  %691 = vrot.lane.b32.xlu0 %v2741_v10, %s2571_s28  ;;  %v2229_v52 = vld [vmem:[%s2693_s25 + $0x28] sm:$0x3f] }
  0xa6   : > { %v312_v55 = vpop.permute.xlu1 %311  ;;  %v310_v9 = vpop.permute.xlu0 %309 }
  0xa7   : > { %380 = vst.msk [vmem:[#allocation2 + $0x98] sm:$0xff] %vm220_vm2, %v312_v55  ;;  %379 = vst.msk [vmem:[#allocation2 + $0x90] sm:$0xff] %vm220_vm2, %v310_v9 }
  0xa8   : > { %406 = vst.msk [vmem:[#allocation2 + $0x9e] sm:$0x3] %vm398_vm6, %v2568_v0  ;;  %697 = vrot.lane.b32.xlu1 %v616_v54, %s2571_s28  ;;  %695 = vrot.lane.b32.xlu0 %v2751_v12, %s2571_s28 }
  0xaa   : > { %v316_v57 = vpop.permute.xlu1 %315  ;;  %v314_v10 = vpop.permute.xlu0 %313 }
  0xab   : > { %382 = vst.msk [vmem:[#allocation2 + $0xa8] sm:$0xff] %vm220_vm2, %v316_v57  ;;  %381 = vst.msk [vmem:[#allocation2 + $0xa0] sm:$0xff] %vm220_vm2, %v314_v10 }
  0xac   : > { %407 = vst.msk [vmem:[#allocation2 + $0xae] sm:$0x3] %vm398_vm6, %v2568_v0  ;;  %701 = vrot.lane.b32.xlu1 %v618_v56, %s2571_s28  ;;  %699 = vrot.lane.b32.xlu0 %v2756_v13, %s2571_s28 }
  0xae   : > { %v320_v59 = vpop.permute.xlu1 %319  ;;  %v318_v61 = vpop.permute.xlu0 %317 }
  0xaf   : > { %384 = vst.msk [vmem:[#allocation2 + $0xb8] sm:$0xff] %vm220_vm2, %v320_v59  ;;  %383 = vst.msk [vmem:[#allocation2 + $0xb0] sm:$0xff] %vm220_vm2, %v318_v61  ;;  %v1784_v59 = vld [vmem:[%s3936_s1 + $0x10] sm:$0xff]  ;;  %v1006_v61 = vld [vmem:[%s2693_s25 + $0x1a] sm:$0x3f] }
  0xb0   : > { %408 = vst.msk [vmem:[#allocation2 + $0xbe] sm:$0x3] %vm398_vm6, %v2568_v0  ;;  %705 = vrot.lane.b32.xlu1 %v620_v58, %s2571_s28  ;;  %703 = vrot.lane.b32.xlu0 %v2759_v14, %s2571_s28  ;;  %v1785_v58 = vld [vmem:[%s3936_s1 + $0x18] sm:$0xff] }
  0xb2   : > { %v324_v20 = vpop.permute.xlu1 %323  ;;  %v322_v22 = vpop.permute.xlu0 %321 }
  0xb3   : > { %386 = vst.msk [vmem:[#allocation2 + $0xc8] sm:$0xff] %vm220_vm2, %v324_v20  ;;  %385 = vst.msk [vmem:[#allocation2 + $0xc0] sm:$0xff] %vm220_vm2, %v322_v22  ;;  %v1783_v22 = vld [vmem:[%s3936_s1 + $0x8] sm:$0xff] }
  0xb4   : > { %409 = vst.msk [vmem:[#allocation2 + $0xce] sm:$0x3] %vm398_vm6, %v2568_v0  ;;  %709 = vrot.lane.b32.xlu1 %v622_v63, %s2571_s28  ;;  %707 = vrot.lane.b32.xlu0 %v2764_v15, %s2571_s28 }
  0xb6   : > { %v328_v25 = vpop.permute.xlu1 %327  ;;  %v326_v26 = vpop.permute.xlu0 %325 }
  0xb7   : > { %388 = vst.msk [vmem:[#allocation2 + $0xd8] sm:$0xff] %vm220_vm2, %v328_v25  ;;  %387 = vst.msk [vmem:[#allocation2 + $0xd0] sm:$0xff] %vm220_vm2, %v326_v26  ;;  %v1022_v25 = vld [vmem:[%s2693_s25 + $0x9a] sm:$0x3f] }
  0xb8   : > { %410 = vst.msk [vmem:[#allocation2 + $0xde] sm:$0x3] %vm398_vm6, %v2568_v0  ;;  %713 = vrot.lane.b32.xlu1 %v624_v24, %s2571_s28  ;;  %711 = vrot.lane.b32.xlu0 %v2775_v16, %s2571_s28  ;;  %v1782_v24 = vld [vmem:[%s3936_s1] sm:$0xff] }
  0xba   : > { %v332_v28 = vpop.permute.xlu1 %331  ;;  %v330_v29 = vpop.permute.xlu0 %329 }
  0xbb   : > { %390 = vst.msk [vmem:[#allocation2 + $0xe8] sm:$0xff] %vm220_vm2, %v332_v28  ;;  %389 = vst.msk [vmem:[#allocation2 + $0xe0] sm:$0xff] %vm220_vm2, %v330_v29  ;;  %v2285_v28 = vld [vmem:[%s2693_s25 + $0x2a] sm:$0x3f] }
  0xbc   : > { %411 = vst.msk [vmem:[#allocation2 + $0xee] sm:$0x3] %vm398_vm6, %v2568_v0  ;;  %717 = vrot.lane.b32.xlu1 %v626_v27, %s2571_s28  ;;  %715 = vrot.lane.b32.xlu0 %v2783_v18, %s2571_s28  ;;  %v629_v18 = vld [vmem:[%s2693_s25 + $0xf0] sm:$0xff] }
  0xbe   : > { %v336_v32 = vpop.permute.xlu1 %335  ;;  %v334_v33 = vpop.permute.xlu0 %333 }
  0xbf   : > { %392 = vst.msk [vmem:[#allocation2 + $0xf8] sm:$0xff] %vm220_vm2, %v336_v32  ;;  %391 = vst.msk [vmem:[#allocation2 + $0xf0] sm:$0xff] %vm220_vm2, %v334_v33  ;;  %v2247_v33 = vld [vmem:[%s2693_s25 + $0xb8] sm:$0x3f]  ;;  %vm1388_vm2 = vcmask 261344  }
  0xc0   : > { %412 = vst.msk [vmem:[#allocation2 + $0xfe] sm:$0x3] %vm398_vm6, %v2568_v0  ;;  %721 = vrot.lane.b32.xlu1 %v628_v30, %s2571_s28  ;;  %719 = vrot.lane.b32.xlu0 %v3078_v31, %s2571_s28  ;;  %vm1722_vm6 = vcmask 292096  }
  0xc2   : > { %v472_v37 = vpop.permute.xlu1 %471  ;;  %v470_v39 = vpop.permute.xlu0 %469 }
  0xc3   : > { %555 = vst.msk [vmem:[#allocation2 + $0x28] sm:$0x3f] %vm554_vm7, %v472_v37 }
  0xc4   : > { %553 = vst.msk [vmem:[#allocation2 + $0x20] sm:$0xff] %vm393_vm4, %v470_v39  ;;  %725 = vrot.lane.b32.xlu1 %v630_v35, %s2571_s28  ;;  %723 = vrot.lane.b32.xlu0 %v629_v18, %s2571_s28  ;;  %v2231_v35 = vld [vmem:[%s2693_s25 + $0x38] sm:$0x3f] }
  0xc5   : > { %585 = vst.msk [vmem:[#allocation2 + $0x20] sm:$0x3] %vm582_vm5, %v2568_v0 }
  0xc6   : > { %v476_v41 = vpop.permute.xlu1 %475  ;;  %v474_v42 = vpop.permute.xlu0 %473 }
  0xc7   : > { %557 = vst.msk [vmem:[#allocation2 + $0x38] sm:$0x3f] %vm554_vm7, %v476_v41 }
  0xc8   : > { %556 = vst.msk [vmem:[#allocation2 + $0x30] sm:$0xff] %vm393_vm4, %v474_v42  ;;  %859 = vrot.lane.b32.xlu1 %v2713_v4, %s2572_s29  ;;  %857 = vrot.lane.b32.xlu0 %v2699_v2, %s2572_s29  ;;  %v1004_v4 = vld [vmem:[%s2693_s25 + $0xa] sm:$0x3f] }
  0xc9   : > { %586 = vst.msk [vmem:[#allocation2 + $0x30] sm:$0x3] %vm582_vm5, %v2568_v0  ;;  %v1020_v2 = vld [vmem:[%s2693_s25 + $0x8a] sm:$0x3f] }
  0xca   : > { %v480_v43 = vpop.permute.xlu1 %479  ;;  %v478_v45 = vpop.permute.xlu0 %477 }
  0xcb   : > { %559 = vst.msk [vmem:[#allocation2 + $0x48] sm:$0x3f] %vm554_vm7, %v480_v43 }
  0xcc   : > { %558 = vst.msk [vmem:[#allocation2 + $0x40] sm:$0xff] %vm393_vm4, %v478_v45  ;;  %891 = vrot.lane.b32.xlu1 %v2832_v34, %s2572_s29  ;;  %889 = vrot.lane.b32.xlu0 %v2751_v12, %s2572_s29 }
  0xcd   : > { %587 = vst.msk [vmem:[#allocation2 + $0x40] sm:$0x3] %vm582_vm5, %v2568_v0 }
  0xce   : > { %v484_v47 = vpop.permute.xlu1 %483  ;;  %v482_v49 = vpop.permute.xlu0 %481 }
  0xcf   : > { %561 = vst.msk [vmem:[#allocation2 + $0x58] sm:$0x3f] %vm554_vm7, %v484_v47 }
  0xd0   : > { %560 = vst.msk [vmem:[#allocation2 + $0x50] sm:$0xff] %vm393_vm4, %v482_v49  ;;  %1069 = vrot.lane.b32.xlu1 %v1004_v4, %s2573_s30  ;;  %1067 = vrot.lane.b32.xlu0 %v2887_v44, %s2573_s30  ;;  %v2245_v44 = vld [vmem:[%s2693_s25 + $0xa8] sm:$0x3f]  ;;  %v2287_v49 = vld [vmem:[%s2693_s25 + $0x3a] sm:$0x3f] }
  0xd1   : > { %588 = vst.msk [vmem:[#allocation2 + $0x50] sm:$0x3] %vm582_vm5, %v2568_v0 }
  0xd2   : > { %v488_v34 = vpop.permute.xlu1 %487  ;;  %v486_v12 = vpop.permute.xlu0 %485 }
  0xd3   : > { %563 = vst.msk [vmem:[#allocation2 + $0x68] sm:$0x3f] %vm554_vm7, %v488_v34 }
  0xd4   : > { %562 = vst.msk [vmem:[#allocation2 + $0x60] sm:$0xff] %vm393_vm4, %v486_v12  ;;  %1101 = vrot.lane.b32.xlu1 %v1020_v2, %s2573_s30  ;;  %1099 = vrot.lane.b32.xlu0 %v2931_v60, %s2573_s30 }
  0xd5   : > { %589 = vst.msk [vmem:[#allocation2 + $0x60] sm:$0x3] %vm582_vm5, %v2568_v0 }
  0xd6   : > { %v492_v51 = vpop.permute.xlu1 %491  ;;  %v490_v7 = vpop.permute.xlu0 %489 }
  0xd7   : > { %565 = vst.msk [vmem:[#allocation2 + $0x78] sm:$0x3f] %vm554_vm7, %v492_v51 }
  0xd8   : > { %564 = vst.msk [vmem:[#allocation2 + $0x70] sm:$0xff] %vm393_vm4, %v490_v7  ;;  %1307 = vrot.lane.b32.xlu1 %v2759_v14, %s2574_s3  ;;  %1275 = vrot.lane.b32.xlu0 %v2716_v5, %s2574_s3  ;;  %v2233_v7 = vld [vmem:[%s2693_s25 + $0x48] sm:$0x3f] }
  0xd9   : > { %590 = vst.msk [vmem:[#allocation2 + $0x70] sm:$0x3] %vm582_vm5, %v2568_v0 }
  0xda   : > { %v496_v53 = vpop.permute.xlu1 %495  ;;  %v494_v60 = vpop.permute.xlu0 %493 }
  0xdb   : > { %567 = vst.msk [vmem:[#allocation2 + $0x88] sm:$0x3f] %vm554_vm7, %v496_v53  ;;  %v3296_v53 = vld [vmem:[%s2693_s25 + $0xc0] sm:$0xff] }
  0xdc   : > { %566 = vst.msk [vmem:[#allocation2 + $0x80] sm:$0xff] %vm393_vm4, %v494_v60  ;;  %1309 = vrot.lane.b32.xlu1 %v2245_v44, %s2574_s3  ;;  %1277 = vrot.lane.b32.xlu0 %v2229_v52, %s2574_s3 }
  0xdd   : > { %591 = vst.msk [vmem:[#allocation2 + $0x80] sm:$0x3] %vm582_vm5, %v2568_v0 }
  0xde   : > { %v500_v8 = vpop.permute.xlu1 %499  ;;  %v498_v54 = vpop.permute.xlu0 %497 }
  0xdf   : > { %569 = vst.msk [vmem:[#allocation2 + $0x98] sm:$0x3f] %vm554_vm7, %v500_v8  ;;  %v800_v8 = vld [vmem:[%s2693_s25 + $0x38] sm:$0xff] }
  0xe0   : > { %568 = vst.msk [vmem:[#allocation2 + $0x90] sm:$0xff] %vm393_vm4, %v498_v54  ;;  %1481 = vrot.lane.b32.xlu1 %v2759_v14, %s2575_s4  ;;  %1449 = vrot.lane.b32.xlu0 %v2716_v5, %s2575_s4  ;;  %v799_v54 = vld [vmem:[%s2693_s25 + $0x30] sm:$0xff] }
  0xe1   : > { %592 = vst.msk [vmem:[#allocation2 + $0x90] sm:$0x3] %vm582_vm5, %v2568_v0 }
  0xe2   : > { %v504_v55 = vpop.permute.xlu1 %503  ;;  %v502_v9 = vpop.permute.xlu0 %501 }
  0xe3   : > { %571 = vst.msk [vmem:[#allocation2 + $0xa8] sm:$0x3f] %vm554_vm7, %v504_v55 }
  0xe4   : > { %570 = vst.msk [vmem:[#allocation2 + $0xa0] sm:$0xff] %vm393_vm4, %v502_v9  ;;  %863 = vrot.lane.b32.xlu1 %v2706_v3, %s2572_s29  ;;  %861 = vrot.lane.b32.xlu0 %v2696_v1, %s2572_s29  ;;  %v1786_v1 = vld [vmem:[%s3936_s1 + $0x20] sm:$0xf] }
  0xe5   : > { %593 = vst.msk [vmem:[#allocation2 + $0xa0] sm:$0x3] %vm582_vm5, %v2568_v0  ;;  %2389 = vmatprep.subr.msk.mxu0 %vm1884_vm8, %v1786_v1  ;;  %2447 = vmatprep.subr.msk.mxu1 %vm1884_vm8, %v1786_v1 }
  0xe6   : > { %v508_v56 = vpop.permute.xlu1 %507  ;;  %v506_v57 = vpop.permute.xlu0 %505  ;;  %2390 = vmatpush3.msk.msra.mxu0 %vm1884_vm8, %v1786_v1  ;;  %2452 = vmatpush3.msk.msra.mxu1 %vm1884_vm8, %v1786_v1  ;;  %v3317_v1 = vld [vmem:[%s2693_s25 + $0xc8] sm:$0xff] }
  0xe7   : > { %573 = vst.msk [vmem:[#allocation2 + $0xb8] sm:$0x3f] %vm554_vm7, %v508_v56  ;;  %2391 = vmatprep.subr.mxu0 %v1785_v58  ;;  %2448 = vmatprep.subr.mxu1 %v1785_v58  ;;  %v816_v56 = vld [vmem:[%s2693_s25 + $0xb8] sm:$0xff] }
  0xe8   : > { %572 = vst.msk [vmem:[#allocation2 + $0xb0] sm:$0xff] %vm393_vm4, %v506_v57  ;;  %895 = vrot.lane.b32.xlu1 %v2841_v36, %s2572_s29  ;;  %893 = vrot.lane.b32.xlu0 %v2756_v13, %s2572_s29  ;;  %v815_v57 = vld [vmem:[%s2693_s25 + $0xb0] sm:$0xff] }
  0xe9   : > { %594 = vst.msk [vmem:[#allocation2 + $0xb0] sm:$0x3] %vm582_vm5, %v2568_v0  ;;  %2392 = vmatpush3.msra.mxu0 %v1785_v58  ;;  %2453 = vmatpush3.msra.mxu1 %v1785_v58 }
  0xea   : > { %v512_v10 = vpop.permute.xlu1 %511  ;;  %v510_v3 = vpop.permute.xlu0 %509  ;;  %2393 = vmatprep.subr.mxu0 %v1784_v59  ;;  %2449 = vmatprep.subr.mxu1 %v1784_v59 }
  0xeb   : > { %575 = vst.msk [vmem:[#allocation2 + $0xc8] sm:$0x3f] %vm554_vm7, %v512_v10  ;;  %2394 = vmatpush3.msra.mxu0 %v1784_v59  ;;  %2454 = vmatpush3.msra.mxu1 %v1784_v59  ;;  %v3331_v59 = vld [vmem:[%s2693_s25 + $0x42] sm:$0xff] }
  0xec   : > { %574 = vst.msk [vmem:[#allocation2 + $0xc0] sm:$0xff] %vm393_vm4, %v510_v3  ;;  %1483 = vrot.lane.b32.xlu1 %v2850_v38, %s2575_s4  ;;  %1451 = vrot.lane.b32.xlu0 %v2748_v11, %s2575_s4 }
  0xed   : > { %595 = vst.msk [vmem:[#allocation2 + $0xc0] sm:$0x3] %vm582_vm5, %v2568_v0  ;;  %2395 = vmatprep.subr.mxu0 %v1783_v22  ;;  %2450 = vmatprep.subr.mxu1 %v1783_v22 }
  0xee   : > { %v516_v13 = vpop.permute.xlu1 %515  ;;  %v514_v36 = vpop.permute.xlu0 %513  ;;  %2396 = vmatpush3.msra.mxu0 %v1783_v22  ;;  %2455 = vmatpush3.msra.mxu1 %v1783_v22  ;;  %v1009_v22 = vld [vmem:[%s2693_s25 + $0x32] sm:$0xff] }
  0xef   : > { %577 = vst.msk [vmem:[#allocation2 + $0xd8] sm:$0x3f] %vm554_vm7, %v516_v13  ;;  %2397 = vmatprep.subr.mxu0 %v1782_v24  ;;  %2451 = vmatprep.subr.mxu1 %v1782_v24  ;;  %v3320_v13 = vld [vmem:[%s2693_s25 + $0x48] sm:$0xff] }
  0xf0   : > { %576 = vst.msk [vmem:[#allocation2 + $0xd0] sm:$0xff] %vm393_vm4, %v514_v36  ;;  %1669 = vrot.lane.b32.xlu1 %v2945_v19, %s2576_s14  ;;  %1637 = vrot.lane.b32.xlu0 %v2901_v48, %s2576_s14 }
  0xf1   : > { %596 = vst.msk [vmem:[#allocation2 + $0xd0] sm:$0x3] %vm582_vm5, %v2568_v0  ;;  %2398 = vmatpush3.msra.mxu0 %v1782_v24  ;;  %2456 = vmatpush3.msra.mxu1 %v1782_v24 }
  0xf2   : > { %v520_v63 = vpop.permute.xlu1 %519  ;;  %v518_v20 = vpop.permute.xlu0 %517 }
  0xf3   : > { %579 = vst.msk [vmem:[#allocation2 + $0xe8] sm:$0x3f] %vm554_vm7, %v520_v63 }
  0xf4   : > { %578 = vst.msk [vmem:[#allocation2 + $0xe0] sm:$0xff] %vm393_vm4, %v518_v20  ;;  %1073 = vrot.lane.b32.xlu1 %v1006_v61, %s2573_s30  ;;  %1071 = vrot.lane.b32.xlu0 %v2894_v46, %s2573_s30  ;;  %v2301_v46 = vld [vmem:[%s2693_s25 + $0xaa] sm:$0x3f]  ;;  %v1010_v20 = vld [vmem:[%s2693_s25 + $0x3a] sm:$0x3f] }
  0xf5   : > { %597 = vst.msk [vmem:[#allocation2 + $0xe0] sm:$0x3] %vm582_vm5, %v2568_v0 }
  0xf6   : > { %v524_v26 = vpop.permute.xlu1 %523  ;;  %v522_v27 = vpop.permute.xlu0 %521 }
  0xf7   : > { %581 = vst.msk [vmem:[#allocation2 + $0xf8] sm:$0x3f] %vm554_vm7, %v524_v26  ;;  %v1025_v26 = vld [vmem:[%s2693_s25 + $0xb2] sm:$0xff] }
  0xf8   : > { %580 = vst.msk [vmem:[#allocation2 + $0xf0] sm:$0xff] %vm393_vm4, %v522_v27  ;;  %1105 = vrot.lane.b32.xlu1 %v1022_v25, %s2573_s30  ;;  %1103 = vrot.lane.b32.xlu0 %v2938_v62, %s2573_s30  ;;  %vm1561_vm4 = vcmask 294144  }
  0xf9   : > { %598 = vst.msk [vmem:[#allocation2 + $0xf0] sm:$0x3] %vm582_vm5, %v2568_v0  ;;  %vm1787_vm5 = vcmask 293888  }
  0xfa   : > { %v666_v29 = vpop.permute.xlu1 %665  ;;  %v664_v30 = vpop.permute.xlu0 %663 }
  0xfb   : > { %762 = vst.msk [vmem:[#allocation2 + $0xa] sm:$0x3f] %vm761_vm9, %v666_v29  ;;  %v2289_v29 = vld [vmem:[%s2693_s25 + $0x4a] sm:$0x3f] }
  0xfc   : > { %760 = vst.msk [vmem:[#allocation2 + $0x2] sm:$0xff] %vm759_vm10, %v664_v30  ;;  %1671 = vrot.lane.b32.xlu1 %v2301_v46, %s2576_s14  ;;  %1639 = vrot.lane.b32.xlu0 %v2285_v28, %s2576_s14  ;;  %v2305_v28 = vld [vmem:[%s2693_s25 + $0xca] sm:$0x3f] }
  0xfe   : > { %v670_v32 = vpop.permute.xlu1 %669  ;;  %v668_v62 = vpop.permute.xlu0 %667 }
  0xff   : > { %764 = vst.msk [vmem:[#allocation2 + $0x1a] sm:$0x3f] %vm761_vm9, %v670_v32 }
 0x100   : > { %763 = vst.msk [vmem:[#allocation2 + $0x12] sm:$0xff] %vm759_vm10, %v668_v62  ;;  %1311 = vrot.lane.b32.xlu1 %v2764_v15, %s2574_s3  ;;  %1279 = vrot.lane.b32.xlu0 %v2719_v6, %s2574_s3  ;;  %v3364_v62 = vld [vmem:[%s2693_s25 + $0xd0] sm:$0xff] }
 0x102   : > { %v674_v18 = vpop.permute.xlu1 %673  ;;  %v672_v37 = vpop.permute.xlu0 %671 }
 0x103   : > { %766 = vst.msk [vmem:[#allocation2 + $0x2a] sm:$0x3f] %vm761_vm9, %v674_v18 }
 0x104   : > { %765 = vst.msk [vmem:[#allocation2 + $0x22] sm:$0xff] %vm759_vm10, %v672_v37  ;;  %1313 = vrot.lane.b32.xlu1 %v2247_v33, %s2574_s3  ;;  %1281 = vrot.lane.b32.xlu0 %v2231_v35, %s2574_s3  ;;  %v3367_v33 = vld [vmem:[%s2693_s25 + $0x50] sm:$0xff]  ;;  %v2251_v37 = vld [vmem:[%s2693_s25 + $0xd8] sm:$0x3f] }
 0x106   : > { %v678_v39 = vpop.permute.xlu1 %677  ;;  %v676_v41 = vpop.permute.xlu0 %675 }
 0x107   : > { %768 = vst.msk [vmem:[#allocation2 + $0x3a] sm:$0x3f] %vm761_vm9, %v678_v39  ;;  %v2235_v39 = vld [vmem:[%s2693_s25 + $0x58] sm:$0x3f] }
 0x108   : > { %767 = vst.msk [vmem:[#allocation2 + $0x32] sm:$0xff] %vm759_vm10, %v676_v41  ;;  %1485 = vrot.lane.b32.xlu1 %v2764_v15, %s2575_s4  ;;  %1453 = vrot.lane.b32.xlu0 %v2719_v6, %s2575_s4 }
 0x10a   : > { %v682_v42 = vpop.permute.xlu1 %681  ;;  %v680_v43 = vpop.permute.xlu0 %679 }
 0x10b   : > { %770 = vst.msk [vmem:[#allocation2 + $0x4a] sm:$0x3f] %vm761_vm9, %v682_v42 }
 0x10c   : > { %769 = vst.msk [vmem:[#allocation2 + $0x42] sm:$0xff] %vm759_vm10, %v680_v43  ;;  %867 = vrot.lane.b32.xlu1 %v2748_v11, %s2572_s29  ;;  %865 = vrot.lane.b32.xlu0 %v2716_v5, %s2572_s29 }
 0x10e   : > { %v686_v45 = vpop.permute.xlu1 %685  ;;  %v684_v4 = vpop.permute.xlu0 %683 }
 0x10f   : > { %772 = vst.msk [vmem:[#allocation2 + $0x5a] sm:$0x3f] %vm761_vm9, %v686_v45 }
 0x110   : > { %771 = vst.msk [vmem:[#allocation2 + $0x52] sm:$0xff] %vm759_vm10, %v684_v4  ;;  %899 = vrot.lane.b32.xlu1 %v2850_v38, %s2572_s29  ;;  %897 = vrot.lane.b32.xlu0 %v2759_v14, %s2572_s29  ;;  %v1008_v14 = vld [vmem:[%s2693_s25 + $0x2a] sm:$0x3f] }
 0x112   : > { %v690_v6 = vpop.permute.xlu1 %689  ;;  %v688_v15 = vpop.permute.xlu0 %687 }
 0x113   : > { %774 = vst.msk [vmem:[#allocation2 + $0x6a] sm:$0x3f] %vm761_vm9, %v690_v6 }
 0x114   : > { %773 = vst.msk [vmem:[#allocation2 + $0x62] sm:$0xff] %vm759_vm10, %v688_v15  ;;  %1487 = vrot.lane.b32.xlu1 %v2859_v40, %s2575_s4  ;;  %1455 = vrot.lane.b32.xlu0 %v2780_v17, %s2575_s4  ;;  %v1024_v17 = vld [vmem:[%s2693_s25 + $0xaa] sm:$0x3f] }
 0x116   : > { %v694_v5 = vpop.permute.xlu1 %693  ;;  %v692_v11 = vpop.permute.xlu0 %691 }
 0x117   : > { %776 = vst.msk [vmem:[#allocation2 + $0x7a] sm:$0x3f] %vm761_vm9, %v694_v5 }
 0x118   : > { %775 = vst.msk [vmem:[#allocation2 + $0x72] sm:$0xff] %vm759_vm10, %v692_v11  ;;  %1673 = vrot.lane.b32.xlu1 %v2952_v21, %s2576_s14  ;;  %1641 = vrot.lane.b32.xlu0 %v2908_v50, %s2576_s14  ;;  %v2303_v50 = vld [vmem:[%s2693_s25 + $0xba] sm:$0x3f] }
 0x119   : > { %v3408_v11 = vld [vmem:[%s2693_s25 + $0xd8] sm:$0xff] }
 0x11a   : > { %v698_v38 = vpop.permute.xlu1 %697  ;;  %v696_v40 = vpop.permute.xlu0 %695 }
 0x11b   : > { %778 = vst.msk [vmem:[#allocation2 + $0x8a] sm:$0x3f] %vm761_vm9, %v698_v38 }
 0x11c   : > { %777 = vst.msk [vmem:[#allocation2 + $0x82] sm:$0xff] %vm759_vm10, %v696_v40  ;;  %1077 = vrot.lane.b32.xlu1 %v1008_v14, %s2573_s30  ;;  %1075 = vrot.lane.b32.xlu0 %v2901_v48, %s2573_s30  ;;  %v3281_v48 = vld [vmem:[%s2693_s25 + $0x40] sm:$0xff]  ;;  %v3411_v14 = vld [vmem:[%s2693_s25 + $0x58] sm:$0xff] }
 0x11e   : > { %v702_v21 = vpop.permute.xlu1 %701  ;;  %v700_v47 = vpop.permute.xlu0 %699 }
 0x11f   : > { %780 = vst.msk [vmem:[#allocation2 + $0x9a] sm:$0x3f] %vm761_vm9, %v702_v21  ;;  %v3423_v21 = vld [vmem:[%s2693_s25 + $0x52] sm:$0xff] }
 0x120   : > { %779 = vst.msk [vmem:[#allocation2 + $0x92] sm:$0xff] %vm759_vm10, %v700_v47  ;;  %1109 = vrot.lane.b32.xlu1 %v1024_v17, %s2573_s30  ;;  %1107 = vrot.lane.b32.xlu0 %v2945_v19, %s2573_s30  ;;  %v2249_v19 = vld [vmem:[%s2693_s25 + $0xc8] sm:$0x3f]  ;;  %v3420_v17 = vld [vmem:[%s2693_s25 + $0xd2] sm:$0xff] }
 0x122   : > { %v706_v2 = vpop.permute.xlu1 %705  ;;  %v704_v34 = vpop.permute.xlu0 %703 }
 0x123   : > { %782 = vst.msk [vmem:[#allocation2 + $0xaa] sm:$0x3f] %vm761_vm9, %v706_v2 }
 0x124   : > { %781 = vst.msk [vmem:[#allocation2 + $0xa2] sm:$0xff] %vm759_vm10, %v704_v34  ;;  %1675 = vrot.lane.b32.xlu1 %v2303_v50, %s2576_s14  ;;  %1643 = vrot.lane.b32.xlu0 %v2287_v49, %s2576_s14  ;;  %v1012_v49 = vld [vmem:[%s2693_s25 + $0x4a] sm:$0x3f] }
 0x126   : > { %v710_v12 = vpop.permute.xlu1 %709  ;;  %v708_v51 = vpop.permute.xlu0 %707 }
 0x127   : > { %784 = vst.msk [vmem:[#allocation2 + $0xba] sm:$0x3f] %vm761_vm9, %v710_v12 }
 0x128   : > { %783 = vst.msk [vmem:[#allocation2 + $0xb2] sm:$0xff] %vm759_vm10, %v708_v51  ;;  %1315 = vrot.lane.b32.xlu1 %v2775_v16, %s2574_s3  ;;  %1283 = vrot.lane.b32.xlu0 %v3281_v48, %s2574_s3  ;;  %v1028_v51 = vld [vmem:[%s2693_s25 + $0xca] sm:$0x3f] }
 0x12a   : > { %v714_v44 = vpop.permute.xlu1 %713  ;;  %v712_v52 = vpop.permute.xlu0 %711 }
 0x12b   : > { %786 = vst.msk [vmem:[#allocation2 + $0xca] sm:$0x3f] %vm761_vm9, %v714_v44 }
 0x12c   : > { %785 = vst.msk [vmem:[#allocation2 + $0xc2] sm:$0xff] %vm759_vm10, %v712_v52  ;;  %1317 = vrot.lane.b32.xlu1 %v2249_v19, %s2574_s3  ;;  %1285 = vrot.lane.b32.xlu0 %v2233_v7, %s2574_s3  ;;  %v1027_v19 = vld [vmem:[%s2693_s25 + $0xc2] sm:$0xff]  ;;  %v2307_v52 = vld [vmem:[%s2693_s25 + $0xda] sm:$0x3f] }
 0x12e   : > { %v718_v16 = vpop.permute.xlu1 %717  ;;  %v716_v60 = vpop.permute.xlu0 %715 }
 0x12f   : > { %788 = vst.msk [vmem:[#allocation2 + $0xda] sm:$0x3f] %vm761_vm9, %v718_v16 }
 0x130   : > { %787 = vst.msk [vmem:[#allocation2 + $0xd2] sm:$0xff] %vm759_vm10, %v716_v60  ;;  %1489 = vrot.lane.b32.xlu1 %v3296_v53, %s2575_s4  ;;  %1457 = vrot.lane.b32.xlu0 %v3281_v48, %s2575_s4 }
 0x132   : > { %v722_v55 = vpop.permute.xlu1 %721  ;;  %v720_v9 = vpop.permute.xlu0 %719 }
 0x133   : > { %790 = vst.msk [vmem:[#allocation2 + $0xea] sm:$0x3f] %vm761_vm9, %v722_v55 }
 0x134   : > { %789 = vst.msk [vmem:[#allocation2 + $0xe2] sm:$0xff] %vm759_vm10, %v720_v9  ;;  %871 = vrot.lane.b32.xlu1 %v800_v8, %s2572_s29  ;;  %869 = vrot.lane.b32.xlu0 %v799_v54, %s2572_s29  ;;  %v3456_v8 = vld [vmem:[%s2693_s25 + $0x60] sm:$0xff] }
 0x136   : > { %v726_v10 = vpop.permute.xlu1 %725  ;;  %v724_v3 = vpop.permute.xlu0 %723 }
 0x137   : > { %792 = vst.msk [vmem:[#allocation2 + $0xfa] sm:$0x3f] %vm761_vm9, %v726_v10  ;;  %v2237_v10 = vld [vmem:[%s2693_s25 + $0x68] sm:$0x3f] }
 0x138   : > { %791 = vst.msk [vmem:[#allocation2 + $0xf2] sm:$0xff] %vm759_vm10, %v724_v3  ;;  %903 = vrot.lane.b32.xlu1 %v816_v56, %s2572_s29  ;;  %901 = vrot.lane.b32.xlu0 %v815_v57, %s2572_s29  ;;  %v2253_v57 = vld [vmem:[%s2693_s25 + $0xe8] sm:$0x3f] }
 0x13a   : > { %v860_v36 = vpop.permute.xlu1 %859  ;;  %v858_v58 = vpop.permute.xlu0 %857 }
 0x13b   : > { %955 = vst.msk [vmem:[#allocation2 + $0x8] sm:$0xff] %vm953_vm11, %v860_v36  ;;  %954 = vst.msk [vmem:[#allocation2] sm:$0xff] %vm953_vm11, %v858_v58 }
 0x13c   : > { %987 = vst.msk [vmem:[#allocation2 + $0xe] sm:$0x3] %vm986_vm12, %v2568_v0  ;;  %1491 = vrot.lane.b32.xlu1 %v3317_v1, %s2575_s4  ;;  %1459 = vrot.lane.b32.xlu0 %v3320_v13, %s2575_s4 }
 0x13e   : > { %v892_v61 = vpop.permute.xlu1 %891  ;;  %v890_v63 = vpop.permute.xlu0 %889 }
 0x13f   : > { %971 = vst.msk [vmem:[#allocation2 + $0x88] sm:$0xff] %vm953_vm11, %v892_v61  ;;  %970 = vst.msk [vmem:[#allocation2 + $0x80] sm:$0xff] %vm953_vm11, %v890_v63  ;;  %v3499_v63 = vld [vmem:[%s2693_s25 + $0xe8] sm:$0xff] }
 0x140   : > { %995 = vst.msk [vmem:[#allocation2 + $0x8e] sm:$0x3] %vm986_vm12, %v2568_v0  ;;  %1677 = vrot.lane.b32.xlu1 %v2959_v23, %s2576_s14  ;;  %1645 = vrot.lane.b32.xlu0 %v3331_v59, %s2576_s14  ;;  %v1026_v23 = vld [vmem:[%s2693_s25 + $0xba] sm:$0x3f] }
 0x142   : > { %v1070_v24 = vpop.permute.xlu1 %1069  ;;  %v1068_v25 = vpop.permute.xlu0 %1067 }
 0x143   : > { %1166 = vst.msk [vmem:[#allocation2 + $0x8] sm:$0x3f] %vm1165_vm13, %v1070_v24 }
 0x144   : > { %1164 = vst.msk [vmem:[#allocation2] sm:$0xff] %vm1163_vm14, %v1068_v25  ;;  %1081 = vrot.lane.b32.xlu1 %v1010_v20, %s2573_s30  ;;  %1079 = vrot.lane.b32.xlu0 %v1009_v22, %s2573_s30  ;;  %v3502_v20 = vld [vmem:[%s2693_s25 + $0x68] sm:$0xff] }
 0x145   : > { %1204 = vst.msk [vmem:[#allocation2] sm:$0x3] %vm1203_vm15, %v2568_v0  ;;  %v3511_v25 = vld [vmem:[%s2693_s25 + $0xe2] sm:$0xff] }
 0x146   : > { %v1102_v27 = vpop.permute.xlu1 %1101  ;;  %v1100_v46 = vpop.permute.xlu0 %1099 }
 0x147   : > { %1182 = vst.msk [vmem:[#allocation2 + $0x88] sm:$0x3f] %vm1165_vm13, %v1102_v27 }
 0x148   : > { %1181 = vst.msk [vmem:[#allocation2 + $0x80] sm:$0xff] %vm1163_vm14, %v1100_v46  ;;  %1113 = vrot.lane.b32.xlu1 %v1026_v23, %s2573_s30  ;;  %1111 = vrot.lane.b32.xlu0 %v1025_v26, %s2573_s30  ;;  %v3514_v23 = vld [vmem:[%s2693_s25 + $0x62] sm:$0xff]  ;;  %v1014_v46 = vld [vmem:[%s2693_s25 + $0x5a] sm:$0x3f] }
 0x149   : > { %1212 = vst.msk [vmem:[#allocation2 + $0x80] sm:$0x3] %vm1203_vm15, %v2568_v0 }
 0x14a   : > { %v1308_v30 = vpop.permute.xlu1 %1307  ;;  %v1276_v32 = vpop.permute.xlu0 %1275 }
 0x14b   : > { %1376 = vst.msk [vmem:[#allocation2 + $0x82] sm:$0xff] %vm1198_vm0, %v1308_v30  ;;  %1359 = vst.msk [vmem:[#allocation2 + $0x2] sm:$0xff] %vm1198_vm0, %v1276_v32 }
 0x14c   : > { %1679 = vrot.lane.b32.xlu1 %v2305_v28, %s2576_s14  ;;  %1647 = vrot.lane.b32.xlu0 %v2289_v29, %s2576_s14 }
 0x14e   : > { %v1310_v35 = vpop.permute.xlu1 %1309  ;;  %v1278_v18 = vpop.permute.xlu0 %1277 }
 0x14f   : > { %1377 = vst.msk [vmem:[#allocation2 + $0x8a] sm:$0x3f] %vm1360_vm1, %v1310_v35  ;;  %1361 = vst.msk [vmem:[#allocation2 + $0xa] sm:$0x3f] %vm1360_vm1, %v1278_v18  ;;  %v2309_v18 = vld [vmem:[%s2693_s25 + $0xea] sm:$0x3f] }
 0x150   : > { %1319 = vrot.lane.b32.xlu1 %v3364_v62, %s2574_s3  ;;  %1287 = vrot.lane.b32.xlu0 %v3367_v33, %s2574_s3 }
 0x152   : > { %v1482_v41 = vpop.permute.xlu1 %1481  ;;  %v1450_v42 = vpop.permute.xlu0 %1449 }
 0x153   : > { %1549 = vst.msk [vmem:[#allocation2 + $0x80] sm:$0xff] %vm1388_vm2, %v1482_v41  ;;  %1533 = vst.msk [vmem:[#allocation2] sm:$0xff] %vm1388_vm2, %v1450_v42  ;;  %v3547_v42 = vld [vmem:[%s2693_s25 + $0xf0] sm:$0xff] }
 0x154   : > { %1321 = vrot.lane.b32.xlu1 %v2251_v37, %s2574_s3  ;;  %1289 = vrot.lane.b32.xlu0 %v2235_v39, %s2574_s3  ;;  %v2293_v37 = vld [vmem:[%s2693_s25 + $0x6a] sm:$0x3f] }
 0x156   : > { %v864_v43 = vpop.permute.xlu1 %863  ;;  %v862_v45 = vpop.permute.xlu0 %861 }
 0x157   : > { %957 = vst.msk [vmem:[#allocation2 + $0x18] sm:$0xff] %vm953_vm11, %v864_v43  ;;  %956 = vst.msk [vmem:[#allocation2 + $0x10] sm:$0xff] %vm953_vm11, %v862_v45  ;;  %v3550_v43 = vld [vmem:[%s2693_s25 + $0x70] sm:$0xff] }
 0x158   : > { %988 = vst.msk [vmem:[#allocation2 + $0x1e] sm:$0x3] %vm986_vm12, %v2568_v0  ;;  %1493 = vrot.lane.b32.xlu1 %v3364_v62, %s2575_s4  ;;  %1461 = vrot.lane.b32.xlu0 %v3367_v33, %s2575_s4 }
 0x15a   : > { %v896_v4 = vpop.permute.xlu1 %895  ;;  %v894_v6 = vpop.permute.xlu0 %893 }
 0x15b   : > { %973 = vst.msk [vmem:[#allocation2 + $0x98] sm:$0xff] %vm953_vm11, %v896_v4  ;;  %972 = vst.msk [vmem:[#allocation2 + $0x90] sm:$0xff] %vm953_vm11, %v894_v6 }
 0x15c   : > { %996 = vst.msk [vmem:[#allocation2 + $0x9e] sm:$0x3] %vm986_vm12, %v2568_v0  ;;  %875 = vrot.lane.b32.xlu1 %v3320_v13, %s2572_s29  ;;  %873 = vrot.lane.b32.xlu0 %v3281_v48, %s2572_s29 }
 0x15e   : > { %v1484_v15 = vpop.permute.xlu1 %1483  ;;  %v1452_v5 = vpop.permute.xlu0 %1451 }
 0x15f   : > { %1550 = vst.msk [vmem:[#allocation2 + $0x88] sm:$0xff] %vm1388_vm2, %v1484_v15  ;;  %1534 = vst.msk [vmem:[#allocation2 + $0x8] sm:$0xff] %vm1388_vm2, %v1452_v5  ;;  %v2255_v5 = vld [vmem:[%s2693_s25 + $0xf8] sm:$0x3f] }
 0x160   : > { %1575 = vst.msk [vmem:[#allocation2 + $0x8e] sm:$0x3] %vm1566_vm3, %v2568_v0  ;;  %1567 = vst.msk [vmem:[#allocation2 + $0xe] sm:$0x3] %vm1566_vm3, %v2568_v0  ;;  %907 = vrot.lane.b32.xlu1 %v3317_v1, %s2572_s29  ;;  %905 = vrot.lane.b32.xlu0 %v3296_v53, %s2572_s29  ;;  %v2291_v53 = vld [vmem:[%s2693_s25 + $0x5a] sm:$0x3f] }
 0x162   : > { %v1670_v38 = vpop.permute.xlu1 %1669  ;;  %v1638_v40 = vpop.permute.xlu0 %1637 }
 0x163   : > { %1738 = vst.msk [vmem:[#allocation2 + $0x80] sm:$0xff] %vm1561_vm4, %v1670_v38  ;;  %1721 = vst.msk [vmem:[#allocation2] sm:$0xff] %vm1561_vm4, %v1638_v40 }
 0x164   : > { %1495 = vrot.lane.b32.xlu1 %v3408_v11, %s2575_s4  ;;  %1463 = vrot.lane.b32.xlu0 %v3411_v14, %s2575_s4 }
 0x166   : > { %v1074_v47 = vpop.permute.xlu1 %1073  ;;  %v1072_v50 = vpop.permute.xlu0 %1071 }
 0x167   : > { %1168 = vst.msk [vmem:[#allocation2 + $0x18] sm:$0x3f] %vm1165_vm13, %v1074_v47 }
 0x168   : > { %1167 = vst.msk [vmem:[#allocation2 + $0x10] sm:$0xff] %vm1163_vm14, %v1072_v50  ;;  %1681 = vrot.lane.b32.xlu1 %v3420_v17, %s2576_s14  ;;  %1649 = vrot.lane.b32.xlu0 %v3423_v21, %s2576_s14  ;;  %v3583_v50 = vld [vmem:[%s2693_s25 + $0x78] sm:$0xff] }
 0x169   : > { %1205 = vst.msk [vmem:[#allocation2 + $0x10] sm:$0x3] %vm1203_vm15, %v2568_v0 }
 0x16a   : > { %v1106_v2 = vpop.permute.xlu1 %1105  ;;  %v1104_v34 = vpop.permute.xlu0 %1103  ;;  %v1750_v48 = vld [vmem:[#allocation2] sm:$0xff] }
 0x16b   : > { %v1766_v12 = vld [vmem:[#allocation2 + $0x80] sm:$0xff]  ;;  %1184 = vst.msk [vmem:[#allocation2 + $0x98] sm:$0x3f] %vm1165_vm13, %v1106_v2  ;;  %2399 = vmatprep.mubr.msk.f32.mxu0 %vm1787_vm5, %v1750_v48  ;;  %v3596_v48 = vld [vmem:[%s2693_s25 + $0x72] sm:$0xff] }
 0x16c   : > { %1183 = vst.msk [vmem:[#allocation2 + $0x90] sm:$0xff] %vm1163_vm14, %v1104_v34  ;;  %2423 = vmatprep.mubr.msk.f32.mxu1 %vm1787_vm5, %v1766_v12  ;;  %1085 = vrot.lane.b32.xlu1 %v1012_v49, %s2573_s30  ;;  %v821_v49 = vld [vmem:[%s2693_s25 + $0xe0] sm:$0xff]  ;;  %v3599_v12 = vld [vmem:[%s2693_s25 + $0xf8] sm:$0xff] }
 0x16d   : > { %1213 = vst.msk [vmem:[#allocation2 + $0x90] sm:$0x3] %vm1203_vm15, %v2568_v0  ;;  %1083 = vrot.lane.b32.xlu0 %v3331_v59, %s2573_s30 }
 0x16e   : > { %v1672_v7 = vpop.permute.xlu1 %1671  ;;  %v1640_v44 = vpop.permute.xlu0 %1639 }
 0x16f   : > { %1739 = vst.msk [vmem:[#allocation2 + $0x88] sm:$0x3f] %vm1722_vm6, %v1672_v7  ;;  %1723 = vst.msk [vmem:[#allocation2 + $0x8] sm:$0x3f] %vm1722_vm6, %v1640_v44  ;;  %v3608_v7 = vld [vmem:[%s2693_s25 + $0xf2] sm:$0xff] }
 0x170   : > { %1117 = vrot.lane.b32.xlu1 %v1028_v51, %s2573_s30 }
 0x171   : > { %1115 = vrot.lane.b32.xlu0 %v1027_v19, %s2573_s30 }
 0x172   : > { %v1312_v16 = vpop.permute.xlu1 %1311  ;;  %v1280_v60 = vpop.permute.xlu0 %1279 }
 0x173   : > { %1378 = vst.msk [vmem:[#allocation2 + $0x92] sm:$0xff] %vm1198_vm0, %v1312_v16  ;;  %1362 = vst.msk [vmem:[#allocation2 + $0x12] sm:$0xff] %vm1198_vm0, %v1280_v60 }
 0x174   : > { %1683 = vrot.lane.b32.xlu1 %v2307_v52, %s2576_s14 }
 0x175   : > { %1651 = vrot.lane.b32.xlu0 %v2291_v53, %s2576_s14  ;;  %v1016_v53 = vld [vmem:[%s2693_s25 + $0x6a] sm:$0x3f] }
 0x176   : > { %v1314_v54 = vpop.permute.xlu1 %1313  ;;  %v1282_v55 = vpop.permute.xlu0 %1281  ;;  %v1751_v9 = vld [vmem:[#allocation2 + $0x8] sm:$0xff] }
 0x177   : > { %v1767_v56 = vld [vmem:[#allocation2 + $0x88] sm:$0xff]  ;;  %1379 = vst.msk [vmem:[#allocation2 + $0x9a] sm:$0x3f] %vm1360_vm1, %v1314_v54  ;;  %1363 = vst.msk [vmem:[#allocation2 + $0x1a] sm:$0x3f] %vm1360_vm1, %v1282_v55  ;;  %2400 = vmatmul.mubr.msk.f32.vlgmr.msra.gmra.mxu0 %vm1787_vm5, %v1751_v9 }
 0x178   : > { %2424 = vmatmul.mubr.msk.f32.vlgmr.msra.gmra.mxu1 %vm1787_vm5, %v1767_v56  ;;  %1323 = vrot.lane.b32.xlu1 %v3078_v31, %s2574_s3  ;;  %v2295_v55 = vld [vmem:[%s2693_s25 + $0x7a] sm:$0x3f] }
 0x179   : > { %1291 = vrot.lane.b32.xlu0 %v3456_v8, %s2574_s3 }
 0x17a   : > { %v1486_v3 = vpop.permute.xlu1 %1485  ;;  %v1454_v1 = vpop.permute.xlu0 %1453 }
 0x17b   : > { %1551 = vst.msk [vmem:[#allocation2 + $0x90] sm:$0xff] %vm1388_vm2, %v1486_v3  ;;  %1535 = vst.msk [vmem:[#allocation2 + $0x10] sm:$0xff] %vm1388_vm2, %v1454_v1 }
 0x17c   : > { %1325 = vrot.lane.b32.xlu1 %v2253_v57, %s2574_s3  ;;  %v2311_v57 = vld [vmem:[%s2693_s25 + $0xfa] sm:$0x3f] }
 0x17d   : > { %1293 = vrot.lane.b32.xlu0 %v2237_v10, %s2574_s3  ;;  %v1032_v10 = vld [vmem:[%s2693_s25 + $0xea] sm:$0x3f] }
 0x17e   : > { %v868_v13 = vpop.permute.xlu1 %867  ;;  %v866_v36 = vpop.permute.xlu0 %865 }
 0x17f   : > { %959 = vst.msk [vmem:[#allocation2 + $0x28] sm:$0xff] %vm953_vm11, %v868_v13  ;;  %958 = vst.msk [vmem:[#allocation2 + $0x20] sm:$0xff] %vm953_vm11, %v866_v36  ;;  %v2240_v13 = vld [vmem:[%s2693_s25 + $0x80] sm:$0xff]  ;;  %v2241_v36 = vld [vmem:[%s2693_s25 + $0x88] sm:$0x3f] }
 0x180   : > { %989 = vst.msk [vmem:[#allocation2 + $0x2e] sm:$0x3] %vm986_vm12, %v2568_v0  ;;  %1497 = vrot.lane.b32.xlu1 %v3078_v31, %s2575_s4 }
 0x181   : > { %1465 = vrot.lane.b32.xlu0 %v3456_v8, %s2575_s4 }
 0x182   : > { %v900_v58 = vpop.permute.xlu1 %899  ;;  %v898_v59 = vpop.permute.xlu0 %897 }
 0x183   : > { %975 = vst.msk [vmem:[#allocation2 + $0xa8] sm:$0xff] %vm953_vm11, %v900_v58  ;;  %974 = vst.msk [vmem:[#allocation2 + $0xa0] sm:$0xff] %vm953_vm11, %v898_v59 }
 0x184   : > { %997 = vst.msk [vmem:[#allocation2 + $0xae] sm:$0x3] %vm986_vm12, %v2568_v0  ;;  %879 = vrot.lane.b32.xlu1 %v3411_v14, %s2572_s29 }
 0x185   : > { %877 = vrot.lane.b32.xlu0 %v3367_v33, %s2572_s29 }
 0x186   : > { %v1488_v31 = vpop.permute.xlu1 %1487  ;;  %v1456_v61 = vpop.permute.xlu0 %1455 }
 0x187   : > { %1552 = vst.msk [vmem:[#allocation2 + $0x98] sm:$0xff] %vm1388_vm2, %v1488_v31  ;;  %1536 = vst.msk [vmem:[#allocation2 + $0x18] sm:$0xff] %vm1388_vm2, %v1456_v61 }
 0x188   : > { %1576 = vst.msk [vmem:[#allocation2 + $0x9e] sm:$0x3] %vm1566_vm3, %v2568_v0  ;;  %1568 = vst.msk [vmem:[#allocation2 + $0x1e] sm:$0x3] %vm1566_vm3, %v2568_v0  ;;  %911 = vrot.lane.b32.xlu1 %v3408_v11, %s2572_s29  ;;  %v2239_v11 = vld [vmem:[%s2693_s25 + $0x78] sm:$0x3f] }
 0x189   : > { %909 = vrot.lane.b32.xlu0 %v3364_v62, %s2572_s29  ;;  %v1030_v62 = vld [vmem:[%s2693_s25 + $0xda] sm:$0x3f] }
 0x18a   : > { %v1674_v22 = vpop.permute.xlu1 %1673  ;;  %v1642_v24 = vpop.permute.xlu0 %1641 }
 0x18b   : > { %1740 = vst.msk [vmem:[#allocation2 + $0x90] sm:$0xff] %vm1561_vm4, %v1674_v22  ;;  %1724 = vst.msk [vmem:[#allocation2 + $0x10] sm:$0xff] %vm1561_vm4, %v1642_v24 }
 0x18c   : > { %1499 = vrot.lane.b32.xlu1 %v3499_v63, %s2575_s4 }
 0x18d   : > { %1467 = vrot.lane.b32.xlu0 %v3502_v20, %s2575_s4 }
 0x18e   : > { %v1078_v26 = vpop.permute.xlu1 %1077  ;;  %v1076_v27 = vpop.permute.xlu0 %1075 }
 0x18f   : > { %1170 = vst.msk [vmem:[#allocation2 + $0x28] sm:$0x3f] %vm1165_vm13, %v1078_v26 }
 0x190   : > { %1169 = vst.msk [vmem:[#allocation2 + $0x20] sm:$0xff] %vm1163_vm14, %v1076_v27  ;;  %1685 = vrot.lane.b32.xlu1 %v3511_v25, %s2576_s14 }
 0x191   : > { %1206 = vst.msk [vmem:[#allocation2 + $0x20] sm:$0x3] %vm1203_vm15, %v2568_v0  ;;  %1653 = vrot.lane.b32.xlu0 %v3514_v23, %s2576_s14 }
 0x192   : > { %v1110_v28 = vpop.permute.xlu1 %1109  ;;  %v1108_v29 = vpop.permute.xlu0 %1107  ;;  %v1752_v30 = vld [vmem:[#allocation2 + $0x10] sm:$0xff] }
 0x193   : > { %v1768_v32 = vld [vmem:[#allocation2 + $0x90] sm:$0xff]  ;;  %1186 = vst.msk [vmem:[#allocation2 + $0xa8] sm:$0x3f] %vm1165_vm13, %v1110_v28  ;;  %2402 = vmatprep.mubr.msk.f32.mxu0 %vm1787_vm5, %v1752_v30 }
 0x194   : > { %1185 = vst.msk [vmem:[#allocation2 + $0xa0] sm:$0xff] %vm1163_vm14, %v1108_v29  ;;  %2426 = vmatprep.mubr.msk.f32.mxu1 %vm1787_vm5, %v1768_v32  ;;  %1089 = vrot.lane.b32.xlu1 %v1014_v46, %s2573_s30  ;;  %v1018_v29 = vld [vmem:[%s2693_s25 + $0x7a] sm:$0x3f] }
 0x195   : > { %1214 = vst.msk [vmem:[#allocation2 + $0xa0] sm:$0x3] %vm1203_vm15, %v2568_v0  ;;  %1087 = vrot.lane.b32.xlu0 %v3423_v21, %s2573_s30 }
 0x196   : > { %v1676_v33 = vpop.permute.xlu1 %1675  ;;  %v1644_v35 = vpop.permute.xlu0 %1643 }
 0x197   : > { %1741 = vst.msk [vmem:[#allocation2 + $0x98] sm:$0x3f] %vm1722_vm6, %v1676_v33  ;;  %1725 = vst.msk [vmem:[#allocation2 + $0x18] sm:$0x3f] %vm1722_vm6, %v1644_v35  ;;  %v1034_v33 = vld [vmem:[%s2693_s25 + $0xfa] sm:$0x3f] }
 0x198   : > { %1121 = vrot.lane.b32.xlu1 %v1030_v62, %s2573_s30  ;;  %v2297_v62 = vld [vmem:[%s2693_s25 + $0x8a] sm:$0x3f] }
 0x199   : > { %1119 = vrot.lane.b32.xlu0 %v3420_v17, %s2573_s30 }
 0x19a   : > { %v1316_v39 = vpop.permute.xlu1 %1315  ;;  %v1284_v41 = vpop.permute.xlu0 %1283 }
 0x19b   : > { %1380 = vst.msk [vmem:[#allocation2 + $0xa2] sm:$0xff] %vm1198_vm0, %v1316_v39  ;;  %1364 = vst.msk [vmem:[#allocation2 + $0x22] sm:$0xff] %vm1198_vm0, %v1284_v41  ;;  %v2243_v39 = vld [vmem:[%s2693_s25 + $0x98] sm:$0x3f] }
 0x19c   : > { %1687 = vrot.lane.b32.xlu1 %v2309_v18, %s2576_s14 }
 0x19d   : > { %1655 = vrot.lane.b32.xlu0 %v2293_v37, %s2576_s14  ;;  %v2242_v37 = vld [vmem:[%s2693_s25 + $0x90] sm:$0xff] }
 0x19e   : > { %v1318_v45 = vpop.permute.xlu1 %1317  ;;  %v1286_v4 = vpop.permute.xlu0 %1285  ;;  %v1753_v6 = vld [vmem:[#allocation2 + $0x18] sm:$0xff] }
 0x19f   : > { %v1769_v15 = vld [vmem:[#allocation2 + $0x98] sm:$0xff]  ;;  %1381 = vst.msk [vmem:[#allocation2 + $0xaa] sm:$0x3f] %vm1360_vm1, %v1318_v45  ;;  %1365 = vst.msk [vmem:[#allocation2 + $0x2a] sm:$0x3f] %vm1360_vm1, %v1286_v4  ;;  %2403 = vmatmul.mubr.msk.f32.gmra.mxu0 %vm1787_vm5, %v1753_v6 }
 0x1a0   : > { %2427 = vmatmul.mubr.msk.f32.gmra.mxu1 %vm1787_vm5, %v1769_v15  ;;  %1327 = vrot.lane.b32.xlu1 %v3547_v42, %s2574_s3  ;;  %v2271_v4 = vld [vmem:[%s2693_s25 + $0x98] sm:$0xff] }
 0x1a1   : > { %1295 = vrot.lane.b32.xlu0 %v3550_v43, %s2574_s3 }
 0x1a2   : > { %v1490_v14 = vpop.permute.xlu1 %1489  ;;  %v1458_v38 = vpop.permute.xlu0 %1457 }
 0x1a3   : > { %1553 = vst.msk [vmem:[#allocation2 + $0xa0] sm:$0xff] %vm1388_vm2, %v1490_v14  ;;  %1537 = vst.msk [vmem:[#allocation2 + $0x20] sm:$0xff] %vm1388_vm2, %v1458_v38 }
 0x1a4   : > { %1329 = vrot.lane.b32.xlu1 %v2255_v5, %s2574_s3  ;;  %v2298_v5 = vld [vmem:[%s2693_s25 + $0x92] sm:$0xff] }
 0x1a5   : > { %1297 = vrot.lane.b32.xlu0 %v2239_v11, %s2574_s3  ;;  %v2299_v11 = vld [vmem:[%s2693_s25 + $0x9a] sm:$0x3f] }
 0x1a6   : > { %v872_v40 = vpop.permute.xlu1 %871  ;;  %v870_v17 = vpop.permute.xlu0 %869 }
 0x1a7   : > { %961 = vst.msk [vmem:[#allocation2 + $0x38] sm:$0xff] %vm953_vm11, %v872_v40  ;;  %960 = vst.msk [vmem:[#allocation2 + $0x30] sm:$0xff] %vm953_vm11, %v870_v17 }
 0x1a8   : > { %990 = vst.msk [vmem:[#allocation2 + $0x3e] sm:$0x3] %vm986_vm12, %v2568_v0  ;;  %1501 = vrot.lane.b32.xlu1 %v3547_v42, %s2575_s4 }
 0x1a9   : > { %1469 = vrot.lane.b32.xlu0 %v3550_v43, %s2575_s4 }
 0x1aa   : > { %v904_v21 = vpop.permute.xlu1 %903  ;;  %v902_v47 = vpop.permute.xlu0 %901 }
 0x1ab   : > { %977 = vst.msk [vmem:[#allocation2 + $0xb8] sm:$0xff] %vm953_vm11, %v904_v21  ;;  %976 = vst.msk [vmem:[#allocation2 + $0xb0] sm:$0xff] %vm953_vm11, %v902_v47 }
 0x1ac   : > { %998 = vst.msk [vmem:[#allocation2 + $0xbe] sm:$0x3] %vm986_vm12, %v2568_v0  ;;  %883 = vrot.lane.b32.xlu1 %v3502_v20, %s2572_s29 }
 0x1ad   : > { %881 = vrot.lane.b32.xlu0 %v3456_v8, %s2572_s29 }
 0x1ae   : > { %v1492_v2 = vpop.permute.xlu1 %1491  ;;  %v1460_v34 = vpop.permute.xlu0 %1459 }
 0x1af   : > { %1554 = vst.msk [vmem:[#allocation2 + $0xa8] sm:$0xff] %vm1388_vm2, %v1492_v2  ;;  %1538 = vst.msk [vmem:[#allocation2 + $0x28] sm:$0xff] %vm1388_vm2, %v1460_v34 }
 0x1b0   : > { %1577 = vst.msk [vmem:[#allocation2 + $0xae] sm:$0x3] %vm1566_vm3, %v2568_v0  ;;  %1569 = vst.msk [vmem:[#allocation2 + $0x2e] sm:$0x3] %vm1566_vm3, %v2568_v0  ;;  %1471 = vrot.lane.b32.xlu1 %v3583_v50, %s2575_s4 }
 0x1b1   : > { %913 = vrot.lane.b32.xlu0 %v821_v49, %s2572_s29 }
 0x1b2   : > { %v1678_v51 = vpop.permute.xlu1 %1677  ;;  %v1646_v19 = vpop.permute.xlu0 %1645 }
 0x1b3   : > { %1742 = vst.msk [vmem:[#allocation2 + $0xa0] sm:$0xff] %vm1561_vm4, %v1678_v51  ;;  %1726 = vst.msk [vmem:[#allocation2 + $0x20] sm:$0xff] %vm1561_vm4, %v1646_v19 }
 0x1b4   : > { %1657 = vrot.lane.b32.xlu1 %v3596_v48, %s2576_s14 }
 0x1b5   : > { %1503 = vrot.lane.b32.xlu0 %v3599_v12, %s2575_s4 }
 0x1b6   : > { %v1082_v44 = vpop.permute.xlu1 %1081  ;;  %v1080_v52 = vpop.permute.xlu0 %1079 }
 0x1b7   : > { %1172 = vst.msk [vmem:[#allocation2 + $0x38] sm:$0x3f] %vm1165_vm13, %v1082_v44 }
 0x1b8   : > { %1171 = vst.msk [vmem:[#allocation2 + $0x30] sm:$0xff] %vm1163_vm14, %v1080_v52  ;;  %915 = vrot.lane.b32.xlu1 %v3499_v63, %s2572_s29 }
 0x1b9   : > { %1207 = vst.msk [vmem:[#allocation2 + $0x30] sm:$0x3] %vm1203_vm15, %v2568_v0  ;;  %1689 = vrot.lane.b32.xlu0 %v3608_v7, %s2576_s14 }
 0x1ba   : > { %v1114_v16 = vpop.permute.xlu1 %1113  ;;  %v1112_v60 = vpop.permute.xlu0 %1111  ;;  %v1754_v8 = vld [vmem:[#allocation2 + $0x20] sm:$0xff] }
 0x1bb   : > { %v1770_v54 = vld [vmem:[#allocation2 + $0xa0] sm:$0xff]  ;;  %1188 = vst.msk [vmem:[#allocation2 + $0xb8] sm:$0x3f] %vm1165_vm13, %v1114_v16  ;;  %2405 = vmatprep.mubr.msk.f32.mxu0 %vm1787_vm5, %v1754_v8 }
 0x1bc   : > { %1187 = vst.msk [vmem:[#allocation2 + $0xb0] sm:$0xff] %vm1163_vm14, %v1112_v60  ;;  %2429 = vmatprep.mubr.msk.f32.mxu1 %vm1787_vm5, %v1770_v54  ;;  %1093 = vrot.lane.b32.xlu1 %v1016_v53, %s2573_s30 }
 0x1bd   : > { %1215 = vst.msk [vmem:[#allocation2 + $0xb0] sm:$0x3] %vm1203_vm15, %v2568_v0  ;;  %1091 = vrot.lane.b32.xlu0 %v3514_v23, %s2573_s30  ;;  %v2296_v23 = vld [vmem:[%s2693_s25 + $0x82] sm:$0xff] }
 0x1be   : > { %v1680_v9 = vpop.permute.xlu1 %1679  ;;  %v1648_v56 = vpop.permute.xlu0 %1647 }
 0x1bf   : > { %1743 = vst.msk [vmem:[#allocation2 + $0xa8] sm:$0x3f] %vm1722_vm6, %v1680_v9  ;;  %1727 = vst.msk [vmem:[#allocation2 + $0x28] sm:$0x3f] %vm1722_vm6, %v1648_v56 }
 0x1c0   : > { %1659 = vrot.lane.b32.xlu1 %v2295_v55, %s2576_s14 }
 0x1c1   : > { %1123 = vrot.lane.b32.xlu0 %v3511_v25, %s2573_s30  ;;  %v2269_v25 = vld [vmem:[%s2693_s25 + $0x88] sm:$0xff]  ;;  %s134_s25 = sand.u32 1, %s2558_s10  }
 0x1c2   : > { %v1320_v3 = vpop.permute.xlu1 %1319  ;;  %v1288_v1 = vpop.permute.xlu0 %1287  ;;  %s2225_s26 = sshll.u32 %s134_s25, 8  ;;  %s3894_s6 = scalar_lea.sflag [#allocation4], %s134_s25 }
 0x1c3   : > { %1382 = vst.msk [vmem:[#allocation2 + $0xb2] sm:$0xff] %vm1198_vm0, %v1320_v3  ;;  %1366 = vst.msk [vmem:[#allocation2 + $0x32] sm:$0xff] %vm1198_vm0, %v1288_v1  ;;  %s3793_s28 = scalar_lea.vmem [#allocation3], %s2225_s26 }
 0x1c4   : > { %1125 = vrot.lane.b32.xlu1 %v1032_v10, %s2573_s30 }
 0x1c5   : > { %1691 = vrot.lane.b32.xlu0 %v2311_v57, %s2576_s14 }
 0x1c6   : > { %v1322_v58 = vpop.permute.xlu1 %1321  ;;  %v1290_v59 = vpop.permute.xlu0 %1289  ;;  %v1755_v31 = vld [vmem:[#allocation2 + $0x28] sm:$0xff] }
 0x1c7   : > { %v1771_v61 = vld [vmem:[#allocation2 + $0xa8] sm:$0xff]  ;;  %1383 = vst.msk [vmem:[#allocation2 + $0xba] sm:$0x3f] %vm1360_vm1, %v1322_v58  ;;  %1367 = vst.msk [vmem:[#allocation2 + $0x3a] sm:$0x3f] %vm1360_vm1, %v1290_v59  ;;  %2406 = vmatmul.mubr.msk.f32.gmra.mxu0 %vm1787_vm5, %v1755_v31 }
 0x1c8   : > { %2430 = vmatmul.mubr.msk.f32.gmra.mxu1 %vm1787_vm5, %v1771_v61  ;;  %1301 = vrot.lane.b32.xlu1 %v2241_v36, %s2574_s3 }
 0x1c9   : > { %1299 = vrot.lane.b32.xlu0 %v2240_v13, %s2574_s3 }
 0x1ca   : > { %v1494_v63 = vpop.permute.xlu1 %1493  ;;  %v1462_v20 = vpop.permute.xlu0 %1461 }
 0x1cb   : > { %1555 = vst.msk [vmem:[#allocation2 + $0xb0] sm:$0xff] %vm1388_vm2, %v1494_v63  ;;  %1539 = vst.msk [vmem:[#allocation2 + $0x30] sm:$0xff] %vm1388_vm2, %v1462_v20 }
 0x1cc   : > { %885 = vrot.lane.b32.xlu1 %v3550_v43, %s2572_s29 }
 0x1cd   : > { %1473 = vrot.lane.b32.xlu0 %v2240_v13, %s2575_s4 }
 0x1ce   : > { %v876_v22 = vpop.permute.xlu1 %875  ;;  %v874_v24 = vpop.permute.xlu0 %873 }
 0x1cf   : > { %963 = vst.msk [vmem:[#allocation2 + $0x48] sm:$0xff] %vm953_vm11, %v876_v22  ;;  %962 = vst.msk [vmem:[#allocation2 + $0x40] sm:$0xff] %vm953_vm11, %v874_v24 }
 0x1d0   : > { %991 = vst.msk [vmem:[#allocation2 + $0x4e] sm:$0x3] %vm986_vm12, %v2568_v0  ;;  %917 = vrot.lane.b32.xlu1 %v3547_v42, %s2572_s29 }
 0x1d1   : > { %887 = vrot.lane.b32.xlu0 %v3583_v50, %s2572_s29 }
 0x1d2   : > { %v908_v26 = vpop.permute.xlu1 %907  ;;  %v906_v27 = vpop.permute.xlu0 %905 }
 0x1d3   : > { %979 = vst.msk [vmem:[#allocation2 + $0xc8] sm:$0xff] %vm953_vm11, %v908_v26  ;;  %978 = vst.msk [vmem:[#allocation2 + $0xc0] sm:$0xff] %vm953_vm11, %v906_v27 }
 0x1d4   : > { %999 = vst.msk [vmem:[#allocation2 + $0xce] sm:$0x3] %vm986_vm12, %v2568_v0  ;;  %1661 = vrot.lane.b32.xlu1 %v2296_v23, %s2576_s14 }
 0x1d5   : > { %1475 = vrot.lane.b32.xlu0 %v2269_v25, %s2575_s4 }
 0x1d6   : > { %v1496_v46 = vpop.permute.xlu1 %1495  ;;  %v1464_v28 = vpop.permute.xlu0 %1463 }
 0x1d7   : > { %1556 = vst.msk [vmem:[#allocation2 + $0xb8] sm:$0xff] %vm1388_vm2, %v1496_v46  ;;  %1540 = vst.msk [vmem:[#allocation2 + $0x38] sm:$0xff] %vm1388_vm2, %v1464_v28 }
 0x1d8   : > { %1578 = vst.msk [vmem:[#allocation2 + $0xbe] sm:$0x3] %vm1566_vm3, %v2568_v0  ;;  %1570 = vst.msk [vmem:[#allocation2 + $0x3e] sm:$0x3] %vm1566_vm3, %v2568_v0  ;;  %1095 = vrot.lane.b32.xlu1 %v3596_v48, %s2573_s30 }
 0x1d9   : > { %919 = vrot.lane.b32.xlu0 %v3599_v12, %s2572_s29  ;;  %s2351_s29 = sshll.u32 %s2615_s13, 12  ;;  %s2577_s13 = smov [#allocation3]  }
 0x1da   : > { %v1682_v30 = vpop.permute.xlu1 %1681  ;;  %v1650_v32 = vpop.permute.xlu0 %1649  ;;  %s3886_s5 = scalar_lea.hbm %s3937_s2, %s2351_s29  ;;  %s2510_s8 = sshll.u32 %s2577_s13, 4  ;;  %s2511_s8 = int_to_ptr.vmem [resolvable:$false] %s2510_s8 }
 0x1db   : > { %1744 = vst.msk [vmem:[#allocation2 + $0xb0] sm:$0xff] %vm1561_vm4, %v1682_v30  ;;  %1728 = vst.msk [vmem:[#allocation2 + $0x30] sm:$0xff] %vm1561_vm4, %v1650_v32 }
 0x1dc   : > { %1127 = vrot.lane.b32.xlu1 %v3608_v7, %s2573_s30 }
 0x1dd   : > { %1097 = vrot.lane.b32.xlu0 %v1018_v29, %s2573_s30 }
 0x1de   : > { %v1086_v35 = vpop.permute.xlu1 %1085 }
 0x1df   : > { %v1084_v18 = vpop.permute.xlu0 %1083  ;;  %1174 = vst.msk [vmem:[#allocation2 + $0x48] sm:$0x3f] %vm1165_vm13, %v1086_v35 }
 0x1e0   : > { %1173 = vst.msk [vmem:[#allocation2 + $0x40] sm:$0xff] %vm1163_vm14, %v1084_v18  ;;  %1129 = vrot.lane.b32.xlu1 %v1034_v33, %s2573_s30  ;;  %s2159_s30 = sshll.u32 %s3793_s28, 4  ;;  %s3889_s30 = int_to_ptr.vmem [resolvable:$true] %s2159_s30 }
 0x1e1   : > { %1208 = vst.msk [vmem:[#allocation2 + $0x40] sm:$0x3] %vm1203_vm15, %v2568_v0  ;;  %1663 = vrot.lane.b32.xlu0 %v2297_v62, %s2576_s14  ;;  %s2506_s7 = scalar_lea.vmem %s3889_s30, 4096  ;;  %p2513_p0 = scmp.lt.s32.totalorder %s3889_s30, %s2511_s8 }
 0x1e2   : > { %v1118_v41 = vpop.permute.xlu1 %1117  ;;  %v1756_v43 = vld [vmem:[#allocation2 + $0x30] sm:$0xff]  ;;  %p2507_p11 = scmp.ne.s32.totalorder %s3889_s30, %s2506_s7 }
 0x1e3   : > { %v1116_v42 = vpop.permute.xlu0 %1115  ;;  %v1772_v45 = vld [vmem:[#allocation2 + $0xb0] sm:$0xff]  ;;  %1190 = vst.msk [vmem:[#allocation2 + $0xc8] sm:$0x3f] %vm1165_vm13, %v1118_v41  ;;  %2408 = vmatprep.mubr.msk.f32.mxu0 %vm1787_vm5, %v1756_v43 }
 0x1e4   : > { %1189 = vst.msk [vmem:[#allocation2 + $0xc0] sm:$0xff] %vm1163_vm14, %v1116_v42  ;;  %2432 = vmatprep.mubr.msk.f32.mxu1 %vm1787_vm5, %v1772_v45  ;;  %1305 = vrot.lane.b32.xlu1 %v2243_v39, %s2574_s3  ;;  %p2508_p12 = pnand %p2507_p11, %p2632_p5 }
 0x1e5   : > { %1216 = vst.msk [vmem:[#allocation2 + $0xc0] sm:$0x3] %vm1203_vm15, %v2568_v0  ;;  %1303 = vrot.lane.b32.xlu0 %v2242_v37, %s2574_s3 }
 0x1e6   : > { %v1684_v6 = vpop.permute.xlu1 %1683  ;;  %p2509_p13 = pneg %p2508_p12 }
 0x1e7   : > { %v1652_v15 = vpop.permute.xlu0 %1651  ;;  %1745 = vst.msk [vmem:[#allocation2 + $0xb8] sm:$0x3f] %vm1722_vm6, %v1684_v6 }
 0x1e8   : > { %1729 = vst.msk [vmem:[#allocation2 + $0x38] sm:$0x3f] %vm1722_vm6, %v1652_v15  ;;  %1479 = vrot.lane.b32.xlu1 %v2271_v4, %s2575_s4 }
 0x1e9   : > { %1477 = vrot.lane.b32.xlu0 %v2242_v37, %s2575_s4 }
 0x1ea   : > { %v1324_v14 = vpop.permute.xlu1 %1323 }
 0x1eb   : > { %v1292_v38 = vpop.permute.xlu0 %1291  ;;  %1384 = vst.msk [vmem:[#allocation2 + $0xc2] sm:$0xff] %vm1198_vm0, %v1324_v14 }
 0x1ec   : > { %1368 = vst.msk [vmem:[#allocation2 + $0x42] sm:$0xff] %vm1198_vm0, %v1292_v38  ;;  %1667 = vrot.lane.b32.xlu1 %v2299_v11, %s2576_s14 }
 0x1ed   : > { %1665 = vrot.lane.b32.xlu0 %v2298_v5, %s2576_s14  ;;  %s2512_s14 = scalar_lea.vmem %s2511_s8, 8192 }
 0x1ee   : > { %v1326_v40 = vpop.permute.xlu1 %1325  ;;  %v1773_v47 = vld [vmem:[#allocation2 + $0xb8] sm:$0xff]  ;;  %p2514_p1 = scmp.lt.s32.totalorder %s2512_s14, %s2506_s7 }
 0x1ef   : > { %v1294_v17 = vpop.permute.xlu0 %1293  ;;  %v1757_v21 = vld [vmem:[#allocation2 + $0x38] sm:$0xff]  ;;  %1385 = vst.msk [vmem:[#allocation2 + $0xca] sm:$0x3f] %vm1360_vm1, %v1326_v40  ;;  %2433 = vmatmul.mubr.msk.f32.gmra.mxu1 %vm1787_vm5, %v1773_v47 }
 0x1f0   : > { %1369 = vst.msk [vmem:[#allocation2 + $0x4a] sm:$0x3f] %vm1360_vm1, %v1294_v17  ;;  %2409 = vmatmul.mubr.msk.f32.gmra.mxu0 %vm1787_vm5, %v1757_v21  ;;  %p2515_p2 = por %p2514_p1, %p2513_p0 }
 0x1f2   : > { %v1498_v50 = vpop.permute.xlu1 %1497  ;;  %p2516_p3 = pnand %p2515_p2, %p2509_p13 }
 0x1f3   : > { %v1466_v49 = vpop.permute.xlu0 %1465  ;;  %1557 = vst.msk [vmem:[#allocation2 + $0xc0] sm:$0xff] %vm1388_vm2, %v1498_v50 }
 0x1f4   : > { %1541 = vst.msk [vmem:[#allocation2 + $0x40] sm:$0xff] %vm1388_vm2, %v1466_v49 }
 0x1f6   : > { %v880_v2 = vpop.permute.xlu1 %879 }
 0x1f7   : > { %v878_v34 = vpop.permute.xlu0 %877  ;;  %965 = vst.msk [vmem:[#allocation2 + $0x58] sm:$0xff] %vm953_vm11, %v880_v2 }
 0x1f8   : > { %964 = vst.msk [vmem:[#allocation2 + $0x50] sm:$0xff] %vm953_vm11, %v878_v34 }
 0x1f9   : > { %992 = vst.msk [vmem:[#allocation2 + $0x5e] sm:$0x3] %vm986_vm12, %v2568_v0 }
 0x1fa   : > { %v912_v48 = vpop.permute.xlu1 %911 }
 0x1fb   : > { %v910_v12 = vpop.permute.xlu0 %909  ;;  %981 = vst.msk [vmem:[#allocation2 + $0xd8] sm:$0xff] %vm953_vm11, %v912_v48 }
 0x1fc   : > { %980 = vst.msk [vmem:[#allocation2 + $0xd0] sm:$0xff] %vm953_vm11, %v910_v12 }
 0x1fd   : > { %1000 = vst.msk [vmem:[#allocation2 + $0xde] sm:$0x3] %vm986_vm12, %v2568_v0 }
 0x1fe   : > { %v1500_v51 = vpop.permute.xlu1 %1499 }
 0x1ff   : > { %v1468_v19 = vpop.permute.xlu0 %1467  ;;  %1558 = vst.msk [vmem:[#allocation2 + $0xc8] sm:$0xff] %vm1388_vm2, %v1500_v51 }
 0x200   : > { %1542 = vst.msk [vmem:[#allocation2 + $0x48] sm:$0xff] %vm1388_vm2, %v1468_v19 }
 0x201   : > { %1579 = vst.msk [vmem:[#allocation2 + $0xce] sm:$0x3] %vm1566_vm3, %v2568_v0  ;;  %1571 = vst.msk [vmem:[#allocation2 + $0x4e] sm:$0x3] %vm1566_vm3, %v2568_v0 }
 0x202   : > { %v1686_v7 = vpop.permute.xlu1 %1685 }
 0x203   : > { %v1654_v44 = vpop.permute.xlu0 %1653  ;;  %1746 = vst.msk [vmem:[#allocation2 + $0xc0] sm:$0xff] %vm1561_vm4, %v1686_v7 }
 0x204   : > { %1730 = vst.msk [vmem:[#allocation2 + $0x40] sm:$0xff] %vm1561_vm4, %v1654_v44 }
 0x206   : > { %v1090_v52 = vpop.permute.xlu1 %1089 }
 0x207   : > { %v1088_v53 = vpop.permute.xlu0 %1087  ;;  %1176 = vst.msk [vmem:[#allocation2 + $0x58] sm:$0x3f] %vm1165_vm13, %v1090_v52 }
 0x208   : > { %1175 = vst.msk [vmem:[#allocation2 + $0x50] sm:$0xff] %vm1163_vm14, %v1088_v53 }
 0x209   : > { %1209 = vst.msk [vmem:[#allocation2 + $0x50] sm:$0x3] %vm1203_vm15, %v2568_v0 }
 0x20a   : > { %v1122_v16 = vpop.permute.xlu1 %1121  ;;  %v1774_v54 = vld [vmem:[#allocation2 + $0xc0] sm:$0xff] }
 0x20b   : > { %v1120_v60 = vpop.permute.xlu0 %1119  ;;  %v1758_v8 = vld [vmem:[#allocation2 + $0x40] sm:$0xff]  ;;  %1192 = vst.msk [vmem:[#allocation2 + $0xd8] sm:$0x3f] %vm1165_vm13, %v1122_v16  ;;  %2435 = vmatprep.mubr.msk.f32.mxu1 %vm1787_vm5, %v1774_v54 }
 0x20c   : > { %1191 = vst.msk [vmem:[#allocation2 + $0xd0] sm:$0xff] %vm1163_vm14, %v1120_v60  ;;  %2411 = vmatprep.mubr.msk.f32.mxu0 %vm1787_vm5, %v1758_v8 }
 0x20d   : > { %1217 = vst.msk [vmem:[#allocation2 + $0xd0] sm:$0x3] %vm1203_vm15, %v2568_v0 }
 0x20e   : > { %v1688_v55 = vpop.permute.xlu1 %1687 }
 0x20f   : > { %v1656_v9 = vpop.permute.xlu0 %1655  ;;  %1747 = vst.msk [vmem:[#allocation2 + $0xc8] sm:$0x3f] %vm1722_vm6, %v1688_v55 }
 0x210   : > { %1731 = vst.msk [vmem:[#allocation2 + $0x48] sm:$0x3f] %vm1722_vm6, %v1656_v9 }
 0x212   : > { %v1328_v56 = vpop.permute.xlu1 %1327 }
 0x213   : > { %v1296_v57 = vpop.permute.xlu0 %1295  ;;  %1386 = vst.msk [vmem:[#allocation2 + $0xd2] sm:$0xff] %vm1198_vm0, %v1328_v56 }
 0x214   : > { %1370 = vst.msk [vmem:[#allocation2 + $0x52] sm:$0xff] %vm1198_vm0, %v1296_v57 }
 0x216   : > { %v1330_v10 = vpop.permute.xlu1 %1329  ;;  %v1775_v13 = vld [vmem:[#allocation2 + $0xc8] sm:$0xff] }
 0x217   : > { %v1298_v3 = vpop.permute.xlu0 %1297  ;;  %v1759_v1 = vld [vmem:[#allocation2 + $0x48] sm:$0xff]  ;;  %1387 = vst.msk [vmem:[#allocation2 + $0xda] sm:$0x3f] %vm1360_vm1, %v1330_v10  ;;  %2436 = vmatmul.mubr.msk.f32.gmra.mxu1 %vm1787_vm5, %v1775_v13 }
 0x218   : > { %1371 = vst.msk [vmem:[#allocation2 + $0x5a] sm:$0x3f] %vm1360_vm1, %v1298_v3  ;;  %2412 = vmatmul.mubr.msk.f32.gmra.mxu0 %vm1787_vm5, %v1759_v1 }
 0x21a   : > { %v1502_v36 = vpop.permute.xlu1 %1501 }
 0x21b   : > { %v1470_v58 = vpop.permute.xlu0 %1469  ;;  %1559 = vst.msk [vmem:[#allocation2 + $0xd0] sm:$0xff] %vm1388_vm2, %v1502_v36 }
 0x21c   : > { %1543 = vst.msk [vmem:[#allocation2 + $0x50] sm:$0xff] %vm1388_vm2, %v1470_v58 }
 0x21e   : > { %v884_v59 = vpop.permute.xlu1 %883 }
 0x21f   : > { %v882_v31 = vpop.permute.xlu0 %881  ;;  %967 = vst.msk [vmem:[#allocation2 + $0x68] sm:$0xff] %vm953_vm11, %v884_v59 }
 0x220   : > { %966 = vst.msk [vmem:[#allocation2 + $0x60] sm:$0xff] %vm953_vm11, %v882_v31 }
 0x221   : > { %993 = vst.msk [vmem:[#allocation2 + $0x6e] sm:$0x3] %vm986_vm12, %v2568_v0 }
 0x222   : > { %v1472_v61 = vpop.permute.xlu1 %1471 }
 0x223   : > { %v914_v63 = vpop.permute.xlu0 %913  ;;  %1544 = vst.msk [vmem:[#allocation2 + $0x58] sm:$0xff] %vm1388_vm2, %v1472_v61 }
 0x224   : > { %982 = vst.msk [vmem:[#allocation2 + $0xe0] sm:$0xff] %vm953_vm11, %v914_v63 }
 0x225   : > { %1572 = vst.msk [vmem:[#allocation2 + $0x5e] sm:$0x3] %vm1566_vm3, %v2568_v0 }
 0x226   : > { %v1658_v20 = vpop.permute.xlu1 %1657 }
 0x227   : > { %v1504_v22 = vpop.permute.xlu0 %1503  ;;  %1732 = vst.msk [vmem:[#allocation2 + $0x50] sm:$0xff] %vm1561_vm4, %v1658_v20 }
 0x228   : > { %1560 = vst.msk [vmem:[#allocation2 + $0xd8] sm:$0xff] %vm1388_vm2, %v1504_v22 }
 0x229   : > { %1580 = vst.msk [vmem:[#allocation2 + $0xde] sm:$0x3] %vm1566_vm3, %v2568_v0 }
 0x22a   : > { %v916_v24 = vpop.permute.xlu1 %915 }
 0x22b   : > { %v1690_v25 = vpop.permute.xlu0 %1689  ;;  %983 = vst.msk [vmem:[#allocation2 + $0xe8] sm:$0xff] %vm953_vm11, %v916_v24 }
 0x22c   : > { %1748 = vst.msk [vmem:[#allocation2 + $0xd0] sm:$0xff] %vm1561_vm4, %v1690_v25 }
 0x22d   : > { %1001 = vst.msk [vmem:[#allocation2 + $0xee] sm:$0x3] %vm986_vm12, %v2568_v0 }
 0x22e   : > { %v1094_v23 = vpop.permute.xlu1 %1093  ;;  %v1760_v27 = vld [vmem:[#allocation2 + $0x50] sm:$0xff] }
 0x22f   : > { %v1092_v26 = vpop.permute.xlu0 %1091  ;;  %1178 = vst.msk [vmem:[#allocation2 + $0x68] sm:$0x3f] %vm1165_vm13, %v1094_v23  ;;  %2414 = vmatprep.mubr.msk.f32.mxu0 %vm1787_vm5, %v1760_v27 }
 0x230   : > { %1177 = vst.msk [vmem:[#allocation2 + $0x60] sm:$0xff] %vm1163_vm14, %v1092_v26 }
 0x231   : > { %1210 = vst.msk [vmem:[#allocation2 + $0x60] sm:$0x3] %vm1203_vm15, %v2568_v0 }
 0x232   : > { %v1660_v46 = vpop.permute.xlu1 %1659 }
 0x233   : > { %v1124_v28 = vpop.permute.xlu0 %1123  ;;  %v1776_v29 = vld [vmem:[#allocation2 + $0xd0] sm:$0xff]  ;;  %1733 = vst.msk [vmem:[#allocation2 + $0x58] sm:$0x3f] %vm1722_vm6, %v1660_v46 }
 0x234   : > { %1193 = vst.msk [vmem:[#allocation2 + $0xe0] sm:$0xff] %vm1163_vm14, %v1124_v28  ;;  %2438 = vmatprep.mubr.msk.f32.mxu1 %vm1787_vm5, %v1776_v29 }
 0x235   : > { %1199 = vst.msk [vmem:[#allocation2 + $0xe0] sm:$0xff] %vm1198_vm0, %v2568_v0 }
 0x236   : > { %1389 = vst.msk [vmem:[#allocation2 + $0xe0] sm:$0xff] %vm1388_vm2, %v2568_v0  ;;  %v1126_v32 = vpop.permute.xlu1 %1125 }
 0x237   : > { %1562 = vst.msk [vmem:[#allocation2 + $0xe0] sm:$0xff] %vm1561_vm4, %v2568_v0  ;;  %v1692_v30 = vpop.permute.xlu0 %1691  ;;  %v2401_v62 = vpop.f32.mrf.mxu0 }
 0x238   : > { %1749 = vst.msk [vmem:[#allocation2 + $0xd8] sm:$0x3f] %vm1722_vm6, %v1692_v30  ;;  %v2425_v33 = vpop.f32.mrf.mxu1  ;;  %2114 = vst [vmem:[%s3793_s28 + $0x8] sm:$0xff] %v2401_v62 }
 0x239   : > { %1194 = vst.msk [vmem:[#allocation2 + $0xe8] sm:$0x3f] %vm1165_vm13, %v1126_v32  ;;  %2130 = vst [vmem:[%s3793_s28 + $0x88] sm:$0xff] %v2425_v33  ;;  %v1954_v35 = vpop.f32.mrf.mxu0 }
 0x23a   : > { %1200 = vst.msk [vmem:[#allocation2 + $0xe8] sm:$0xff] %vm1198_vm0, %v2568_v0  ;;  %v2034_v18 = vpop.f32.mrf.mxu1  ;;  %2113 = vst [vmem:[%s3793_s28] sm:$0xff] %v1954_v35  ;;  %v1302_v39 = vpop.permute.xlu1 %1301  ;;  %v1761_v41 = vld [vmem:[#allocation2 + $0x58] sm:$0xff] }
 0x23b   : > { %1390 = vst.msk [vmem:[#allocation2 + $0xe8] sm:$0xff] %vm1388_vm2, %v2568_v0  ;;  %2129 = vst [vmem:[%s3793_s28 + $0x80] sm:$0xff] %v2034_v18  ;;  %v1300_v37 = vpop.permute.xlu0 %1299  ;;  %2415 = vmatmul.mubr.msk.f32.gmra.mxu0 %vm1787_vm5, %v1761_v41 }
 0x23c   : > { %1563 = vst.msk [vmem:[#allocation2 + $0xe8] sm:$0xff] %vm1561_vm4, %v2568_v0 }
 0x23d   : > { %1372 = vst.msk [vmem:[#allocation2 + $0x62] sm:$0xff] %vm1198_vm0, %v1300_v37 }
 0x23e   : > { %1373 = vst.msk [vmem:[#allocation2 + $0x6a] sm:$0x3f] %vm1360_vm1, %v1302_v39  ;;  %v1778_v42 = vld [vmem:[#allocation2 + $0xe0] sm:$0xff]  ;;  %v886_v45 = vpop.permute.xlu1 %885 }
 0x23f   : > { %v1474_v43 = vpop.permute.xlu0 %1473  ;;  %v1777_v4 = vld [vmem:[#allocation2 + $0xd8] sm:$0xff]  ;;  %968 = vst.msk [vmem:[#allocation2 + $0x70] sm:$0xff] %vm953_vm11, %v886_v45 }
 0x240   : > { %1545 = vst.msk [vmem:[#allocation2 + $0x60] sm:$0xff] %vm1388_vm2, %v1474_v43  ;;  %2439 = vmatmul.mubr.msk.f32.gmra.mxu1 %vm1787_vm5, %v1777_v4 }
 0x241   : > { %2441 = vmatprep.mubr.msk.f32.mxu1 %vm1787_vm5, %v1778_v42 }
 0x242   : > { %v918_v5 = vpop.permute.xlu1 %917 }
 0x243   : > { %v1779_v6 = vld [vmem:[#allocation2 + $0xe8] sm:$0xff]  ;;  %v888_v15 = vpop.permute.xlu0 %887  ;;  %984 = vst.msk [vmem:[#allocation2 + $0xf0] sm:$0xff] %vm953_vm11, %v918_v5 }
 0x244   : > { %969 = vst.msk [vmem:[#allocation2 + $0x78] sm:$0xff] %vm953_vm11, %v888_v15  ;;  %2442 = vmatmul.mubr.msk.f32.gmra.mxu1 %vm1787_vm5, %v1779_v6 }
 0x245   : > { %994 = vst.msk [vmem:[#allocation2 + $0x7e] sm:$0x3] %vm986_vm12, %v2568_v0 }
 0x246   : > { %v1662_v14 = vpop.permute.xlu1 %1661 }
 0x247   : > { %v1476_v11 = vpop.permute.xlu0 %1475  ;;  %1734 = vst.msk [vmem:[#allocation2 + $0x60] sm:$0xff] %vm1561_vm4, %v1662_v14 }
 0x248   : > { %1546 = vst.msk [vmem:[#allocation2 + $0x68] sm:$0xff] %vm1388_vm2, %v1476_v11 }
 0x249   : > { %1573 = vst.msk [vmem:[#allocation2 + $0x6e] sm:$0x3] %vm1566_vm3, %v2568_v0 }
 0x24a   : > { %v1096_v40 = vpop.permute.xlu1 %1095 }
 0x24b   : > { %v920_v38 = vpop.permute.xlu0 %919  ;;  %1179 = vst.msk [vmem:[#allocation2 + $0x70] sm:$0xff] %vm1163_vm14, %v1096_v40 }
 0x24c   : > { %985 = vst.msk [vmem:[#allocation2 + $0xf8] sm:$0xff] %vm953_vm11, %v920_v38 }
 0x24d   : > { %1002 = vst.msk [vmem:[#allocation2 + $0xfe] sm:$0x3] %vm986_vm12, %v2568_v0 }
 0x24e   : > { %1211 = vst.msk [vmem:[#allocation2 + $0x70] sm:$0x3] %vm1203_vm15, %v2568_v0  ;;  %v1128_v21 = vpop.permute.xlu1 %1127  ;;  %v1762_v47 = vld [vmem:[#allocation2 + $0x60] sm:$0xff] }
 0x24f   : > { %v1098_v17 = vpop.permute.xlu0 %1097  ;;  %1195 = vst.msk [vmem:[#allocation2 + $0xf0] sm:$0xff] %vm1163_vm14, %v1128_v21  ;;  %2417 = vmatprep.mubr.msk.f32.mxu0 %vm1787_vm5, %v1762_v47 }
 0x250   : > { %1180 = vst.msk [vmem:[#allocation2 + $0x78] sm:$0x3f] %vm1165_vm13, %v1098_v17 }
 0x251   : > { %1201 = vst.msk [vmem:[#allocation2 + $0xf0] sm:$0xff] %vm1198_vm0, %v2568_v0 }
 0x252   : > { %1391 = vst.msk [vmem:[#allocation2 + $0xf0] sm:$0xff] %vm1388_vm2, %v2568_v0  ;;  %v1130_v49 = vpop.permute.xlu1 %1129 }
 0x253   : > { %1564 = vst.msk [vmem:[#allocation2 + $0xf0] sm:$0xff] %vm1561_vm4, %v2568_v0  ;;  %v1664_v50 = vpop.permute.xlu0 %1663 }
 0x254   : > { %1735 = vst.msk [vmem:[#allocation2 + $0x68] sm:$0x3f] %vm1722_vm6, %v1664_v50 }
 0x255   : > { %1196 = vst.msk [vmem:[#allocation2 + $0xf8] sm:$0x3f] %vm1165_vm13, %v1130_v49 }
 0x256   : > { %1202 = vst.msk [vmem:[#allocation2 + $0xf8] sm:$0xff] %vm1198_vm0, %v2568_v0  ;;  %v1306_v34 = vpop.permute.xlu1 %1305 }
 0x257   : > { %1392 = vst.msk [vmem:[#allocation2 + $0xf8] sm:$0xff] %vm1388_vm2, %v2568_v0  ;;  %v1304_v2 = vpop.permute.xlu0 %1303 }
 0x258   : > { %1565 = vst.msk [vmem:[#allocation2 + $0xf8] sm:$0xff] %vm1561_vm4, %v2568_v0 }
 0x259   : > { %1374 = vst.msk [vmem:[#allocation2 + $0x72] sm:$0xff] %vm1198_vm0, %v1304_v2 }
 0x25a   : > { %1375 = vst.msk [vmem:[#allocation2 + $0x7a] sm:$0x3f] %vm1360_vm1, %v1306_v34  ;;  %v1780_v48 = vld [vmem:[#allocation2 + $0xf0] sm:$0xff]  ;;  %v1480_v51 = vpop.permute.xlu1 %1479 }
 0x25b   : > { %v1478_v12 = vpop.permute.xlu0 %1477  ;;  %v1763_v19 = vld [vmem:[#allocation2 + $0x68] sm:$0xff]  ;;  %2444 = vmatprep.mubr.msk.f32.mxu1 %vm1787_vm5, %v1780_v48  ;;  %1548 = vst.msk [vmem:[#allocation2 + $0x78] sm:$0xff] %vm1388_vm2, %v1480_v51 }
 0x25c   : > { %1547 = vst.msk [vmem:[#allocation2 + $0x70] sm:$0xff] %vm1388_vm2, %v1478_v12  ;;  %2418 = vmatmul.mubr.msk.f32.gmra.mxu0 %vm1787_vm5, %v1763_v19 }
 0x25d   : > { %1574 = vst.msk [vmem:[#allocation2 + $0x7e] sm:$0x3] %vm1566_vm3, %v2568_v0 }
 0x25e   : > { %v1668_v52 = vpop.permute.xlu1 %1667 }
 0x25f   : > { %v1781_v7 = vld [vmem:[#allocation2 + $0xf8] sm:$0xff]  ;;  %v1666_v44 = vpop.permute.xlu0 %1665  ;;  %1737 = vst.msk [vmem:[#allocation2 + $0x78] sm:$0x3f] %vm1722_vm6, %v1668_v52  ;;  %v2404_v53 = vpop.f32.mrf.mxu0 }
 0x260   : > { %2445 = vmatmul.mubr.msk.f32.gmra.mxu1 %vm1787_vm5, %v1781_v7  ;;  %1736 = vst.msk [vmem:[#allocation2 + $0x70] sm:$0xff] %vm1561_vm4, %v1666_v44  ;;  %v2428_v16 = vpop.f32.mrf.mxu1  ;;  %2116 = vst [vmem:[%s3793_s28 + $0x18] sm:$0xff] %v2404_v53 }
 0x261   : > { %2132 = vst [vmem:[%s3793_s28 + $0x98] sm:$0xff] %v2428_v16  ;;  %v1964_v60 = vpop.f32.mrf.mxu0 }
 0x262   : > { %v2044_v8 = vpop.f32.mrf.mxu1  ;;  %2115 = vst [vmem:[%s3793_s28 + $0x10] sm:$0xff] %v1964_v60 }
 0x263   : > { %2131 = vst [vmem:[%s3793_s28 + $0x90] sm:$0xff] %v2044_v8 }
 0x266   : > { %v1765_v54 = vld [vmem:[#allocation2 + $0x78] sm:$0xff] }
 0x267   : > { %v1764_v0 = vld [vmem:[#allocation2 + $0x70] sm:$0xff] }
 0x268   : > { %2420 = vmatprep.mubr.msk.f32.mxu0 %vm1787_vm5, %v1764_v0 }
 0x269   : > { %2421 = vmatmul.mubr.msk.f32.gmra.mxu0 %vm1787_vm5, %v1765_v54 }
 0x287   : > { %v2407_v55 = vpop.f32.mrf.mxu0 }
 0x288   : > { %v2431_v9 = vpop.f32.mrf.mxu1  ;;  %2118 = vst [vmem:[%s3793_s28 + $0x28] sm:$0xff] %v2407_v55 }
 0x289   : > { %2134 = vst [vmem:[%s3793_s28 + $0xa8] sm:$0xff] %v2431_v9  ;;  %v1974_v56 = vpop.f32.mrf.mxu0 }
 0x28a   : > { %v2054_v57 = vpop.f32.mrf.mxu1  ;;  %2117 = vst [vmem:[%s3793_s28 + $0x20] sm:$0xff] %v1974_v56 }
 0x28b   : > { %2133 = vst [vmem:[%s3793_s28 + $0xa0] sm:$0xff] %v2054_v57 }
 0x2af   : > { %v2434_v3 = vpop.f32.mrf.mxu1 }
 0x2b0   : > { %v2410_v10 = vpop.f32.mrf.mxu0  ;;  %2136 = vst [vmem:[%s3793_s28 + $0xb8] sm:$0xff] %v2434_v3 }
 0x2b1   : > { %2120 = vst [vmem:[%s3793_s28 + $0x38] sm:$0xff] %v2410_v10  ;;  %v2064_v13 = vpop.f32.mrf.mxu1 }
 0x2b2   : > { %v1984_v1 = vpop.f32.mrf.mxu0  ;;  %2135 = vst [vmem:[%s3793_s28 + $0xb0] sm:$0xff] %v2064_v13 }
 0x2b3   : > { %2119 = vst [vmem:[%s3793_s28 + $0x30] sm:$0xff] %v1984_v1 }
 0x2d7   : > { %v2437_v58 = vpop.f32.mrf.mxu1 }
 0x2d8   : > { %v2413_v36 = vpop.f32.mrf.mxu0  ;;  %2138 = vst [vmem:[%s3793_s28 + $0xc8] sm:$0xff] %v2437_v58 }
 0x2d9   : > { %2122 = vst [vmem:[%s3793_s28 + $0x48] sm:$0xff] %v2413_v36  ;;  %v2074_v31 = vpop.f32.mrf.mxu1 }
 0x2da   : > { %v1994_v59 = vpop.f32.mrf.mxu0  ;;  %2137 = vst [vmem:[%s3793_s28 + $0xc0] sm:$0xff] %v2074_v31 }
 0x2db   : > { %2121 = vst [vmem:[%s3793_s28 + $0x40] sm:$0xff] %v1994_v59 }
 0x2fb   : > { %v2416_v61 = vpop.f32.mrf.mxu0 }
 0x2fc   : > { %2124 = vst [vmem:[%s3793_s28 + $0x58] sm:$0xff] %v2416_v61 }
 0x2fd   : > { %v2004_v63 = vpop.f32.mrf.mxu0 }
 0x2fe   : > { %2123 = vst [vmem:[%s3793_s28 + $0x50] sm:$0xff] %v2004_v63 }
 0x300   : > { %v2440_v20 = vpop.f32.mrf.mxu1 }
 0x301   : > { %2140 = vst [vmem:[%s3793_s28 + $0xd8] sm:$0xff] %v2440_v20 }
 0x302   : > { %v2084_v22 = vpop.f32.mrf.mxu1 }
 0x303   : > { %2139 = vst [vmem:[%s3793_s28 + $0xd0] sm:$0xff] %v2084_v22 }
 0x304   : > { %v2443_v24 = vpop.f32.mrf.mxu1 }
 0x305   : > { %2142 = vst [vmem:[%s3793_s28 + $0xe8] sm:$0xff] %v2443_v24 }
 0x306   : > { %v2094_v25 = vpop.f32.mrf.mxu1 }
 0x307   : > { %2141 = vst [vmem:[%s3793_s28 + $0xe0] sm:$0xff] %v2094_v25 }
 0x31c   : > { %v2419_v23 = vpop.f32.mrf.mxu0 }
 0x31d   : > { %2126 = vst [vmem:[%s3793_s28 + $0x68] sm:$0xff] %v2419_v23 }
 0x31e   : > { %v2014_v26 = vpop.f32.mrf.mxu0 }
 0x31f   : > { %2125 = vst [vmem:[%s3793_s28 + $0x60] sm:$0xff] %v2014_v26 }
 0x320   : > { %v2446_v27 = vpop.f32.mrf.mxu1 }
 0x321   : > { %2144 = vst [vmem:[%s3793_s28 + $0xf8] sm:$0xff] %v2446_v27 }
 0x322   : > { %v2104_v46 = vpop.f32.mrf.mxu1 }
 0x323   : > { %2143 = vst [vmem:[%s3793_s28 + $0xf0] sm:$0xff] %v2104_v46 }
 0x329   : > { %v2422_v28 = vpop.f32.mrf.mxu0 }
 0x32a   : > { %2128 = vst [vmem:[%s3793_s28 + $0x78] sm:$0xff] %v2422_v28 }
 0x32b   : > { %v2024_v29 = vpop.f32.mrf.mxu0 }
 0x32c   : > { %2127 = vst [vmem:[%s3793_s28 + $0x70] sm:$0xff] %v2024_v29 }
 0x32d   : > { %2519 = shalt.err (!%p2516_p3)
}
 0x32e   : > { %s2520_s16 = scalar_lea.hbm %s3886_s5, 4096  ;;  %s2524_s22 = scalar_lea.hbm %s3937_s2, 8192 }
 0x32f   : > { %p2521_p4 = scmp.ne.s32.totalorder %s3886_s5, %s2520_s16  ;;  %p2525_p9 = scmp.lt.s32.totalorder %s3886_s5, %s3937_s2 }
 0x330   : > { %p2526_p10 = scmp.lt.s32.totalorder %s2524_s22, %s2520_s16 }
 0x331   : > { %p2522_p7 = pnand %p2521_p4, %p2632_p5 }
 0x332   : > { %p2527_p11 = por %p2526_p10, %p2525_p9 }
 0x333   : > { %p2523_p8 = pneg %p2522_p7 }
 0x335   : > { %p2528_p12 = pnand %p2527_p11, %p2523_p8 }
 0x337   : > { %2531 = shalt.err (!%p2528_p12)
}
 0x338   : > { %s2578_s25 = smov 128  }
 0x339   : > { %2457 = dma.vmem_to_hbm [thread:$0]  (%p2632_p5), %s3889_s30, 4096, %s3886_s5, %s3894_s6, %s2578_s25, %s2578_s25, %s2570_s27  }
 0x33a PF: > { %p2463_p13 = scmp.ge.s32.totalorder %s2566_s12, 2  ;;  %s2174_s26 = sand.u32 1, %s2554_s9  }
 0x33b   : > { %s2175_s28 = scalar_lea.sflag [#allocation4], %s2174_s26 }
 0x33c   : > { %p2460_p0 = pnand %p2463_p13, %p2636_p6 }
 0x33e   : > { %p2461_p1 = pneg %p2460_p0 }
 0x340   : > { %2549 = dma.done.wait (%p2461_p1), %s2175_s28, 4096  }
 0x341   : > { %2551 = vsyncadd (%p2461_p1), %s2175_s28, 4294963200  ;;  %p12_p2 = scmp.ge.s32.totalorder %s2619_s15, 4   ;;  %s3940_s9 = smov %s2558_s10 }
 0x342   : > { %s3941_s10 = smov %s2562_s11  ;;  %s3942_s11 = smov %s2630_s18 }
 0x343   : > { %s3943_s12 = smov %s2619_s15  ;;  %14 = sbr.rel (!%p12_p2) target bundleno = 3 (0x3), region = 66 }
 0x348   :  { %2180 = vsyncpa [#allocation4], 1 }
 0x349   :  { %2182 = vsyncpa [#allocation4 + $0x1], 1 }

</bundles_post_ra>
